<compile_context>
chip_gen: v5e
topology: v5e:2x2
jax: 0.10.0
libtpu: 0.0.40
codegen_flags: <defaults>
</compile_context>

<pallas_src>
import functools
import math

import jax
import jax.numpy as jnp
from jax.experimental import pallas as pl
from jax.experimental.pallas import tpu as pltpu


def _layer_norm(y, gamma, beta, eps=1e-6):
    mu = jnp.mean(y, axis=-1, keepdims=True)
    var = jnp.mean((y - mu) ** 2, axis=-1, keepdims=True)
    return (y - mu) * jax.lax.rsqrt(var + eps) * gamma + beta


def encoder_stack_kernel(x_ref, mask_ref,
                         wq_ref, bq_ref, wk_ref, bk_ref, wv_ref, bv_ref,
                         wo_ref, bo_ref, g0_ref, be0_ref,
                         w1_ref, b1_ref, w2_ref, b2_ref, g1_ref, be1_ref,
                         o_ref, *, num_heads, bt, seq):
    l = pl.program_id(1)

    # Layer 0: seed the activation carry (held in the revisited output block).
    @pl.when(l == 0)
    def _():
        o_ref[...] = x_ref[...]

    x = o_ref[...]                         # (bt*seq, D) f32 current activations
    M, D = x.shape
    dh = D // num_heads
    scale = 1.0 / math.sqrt(dh)

    mask = mask_ref[...]                   # (bt, 1, seq) f32: 1 = keep, 0 = pad
    neg_bias = (1.0 - mask) * (-1e9)       # additive mask bias, kept in f32

    # --- Multi-head self-attention ---
    x_b = x.astype(jnp.bfloat16)
    wq = wq_ref[0]; wk = wk_ref[0]; wv = wv_ref[0]; wo = wo_ref[0]   # bf16 (D, D)

    q = jnp.dot(x_b, wq, preferred_element_type=jnp.float32) + bq_ref[0]
    k = jnp.dot(x_b, wk, preferred_element_type=jnp.float32) + bk_ref[0]
    v = jnp.dot(x_b, wv, preferred_element_type=jnp.float32) + bv_ref[0]
    q = q * scale                          # fold 1/sqrt(dh) once, in f32

    attn = jnp.zeros((M, D), jnp.float32)
    for h in range(num_heads):             # static loop over heads
        sl = slice(h * dh, (h + 1) * dh)
        qh = q[:, sl].reshape(bt, seq, dh).astype(jnp.bfloat16)
        kh = k[:, sl].reshape(bt, seq, dh).astype(jnp.bfloat16)
        vh = v[:, sl].reshape(bt, seq, dh).astype(jnp.bfloat16)

        # scores: contract the head dim of q and k directly (no k.T transpose)
        s = jnp.einsum('bqd,bkd->bqk', qh, kh,
                       preferred_element_type=jnp.float32)
        s = s + neg_bias                               # masked_fill(mask==0, -1e9)
        s = s - jnp.max(s, axis=-1, keepdims=True)
        p = jnp.exp(s)                                 # f32 softmax
        p = p * pl.reciprocal(jnp.sum(p, axis=-1, keepdims=True), approx=True)

        ctx = jnp.einsum('bqk,bkd->bqd', p.astype(jnp.bfloat16), vh,
                         preferred_element_type=jnp.float32)
        ctx = ctx.reshape(M, dh).astype(jnp.bfloat16)
        # Fold the output projection into the head loop (no concat):
        attn = attn + jnp.dot(ctx, wo[sl, :], preferred_element_type=jnp.float32)
    attn = attn + bo_ref[0]

    # dropout0 (eval = identity) + residual + LayerNorm(eps=1e-6), all f32
    y = _layer_norm(attn + x, g0_ref[0], be0_ref[0])

    # --- Position-wise feed-forward: Linear -> ReLU -> Linear ---
    h1 = jnp.dot(y.astype(jnp.bfloat16), w1_ref[0],
                 preferred_element_type=jnp.float32) + b1_ref[0]
    h1 = jnp.maximum(h1, 0.0)
    ff = jnp.dot(h1.astype(jnp.bfloat16), w2_ref[0],
                 preferred_element_type=jnp.float32) + b2_ref[0]

    # dropout1 (eval = identity) + residual + LayerNorm(eps=1e-6)
    o_ref[...] = _layer_norm(ff + y, g1_ref[0], be1_ref[0])


def positional_encoding(S, D):
    pos = jnp.arange(S, dtype=jnp.float32)[:, None]
    i = jnp.arange(0, D, 2, dtype=jnp.float32)
    div = jnp.exp(i * (-math.log(10000.0) / D))
    pe = jnp.zeros((S, D), dtype=jnp.float32)
    pe = pe.at[:, 0::2].set(jnp.sin(pos * div))
    pe = pe.at[:, 1::2].set(jnp.cos(pos * div))
    return pe


def init_params(key, n_layers, D, Dh):
    """Per-layer weights stacked along a leading layer axis.
    Matmul weights are stored bf16 (MXU operand dtype, halves DMA bytes);
    biases / LayerNorm params stay f32."""
    ks = jax.random.split(key, 6)

    def w(k, shape):
        return (jax.random.normal(k, shape, jnp.float32) * 0.02).astype(jnp.bfloat16)

    zeros = lambda *s: jnp.zeros(s, jnp.float32)
    ones = lambda *s: jnp.ones(s, jnp.float32)
    L = n_layers
    return dict(
        wq=w(ks[0], (L, D, D)), bq=zeros(L, 1, D),
        wk=w(ks[1], (L, D, D)), bk=zeros(L, 1, D),
        wv=w(ks[2], (L, D, D)), bv=zeros(L, 1, D),
        wo=w(ks[3], (L, D, D)), bo=zeros(L, 1, D),
        g0=ones(L, 1, D), be0=zeros(L, 1, D),
        w1=w(ks[4], (L, D, Dh)), b1=zeros(L, 1, Dh),
        w2=w(ks[5], (L, Dh, D)), b2=zeros(L, 1, D),
        g1=ones(L, 1, D), be1=zeros(L, 1, D),
    )


def encoder_forward(token_ids, mask, emb_table, params, num_heads, bt=None):
    B, S = token_ids.shape
    D = emb_table.shape[1]
    L = params["wq"].shape[0]
    Dh = params["w1"].shape[2]

    # Embedding lookup (gather) + positional encoding: glue in plain JAX.
    # NOTE: the custom `Embedding` class wasn't provided; a plain nn.Embedding
    # lookup (no sqrt(d_model) scaling) is assumed.
    x = jnp.take(emb_table, token_ids, axis=0)               # (B, S, D)
    x = x + positional_encoding(S, D)[None]                  # dropout (eval) = identity
    x_flat = x.reshape(B * S, D).astype(jnp.float32)
    mask3 = mask.reshape(B, 1, S).astype(jnp.float32)

    # Fold enough batch elements per grid step so the projection/FFN matmuls
    # have a reasonable M dimension.
    if bt is None:
        bt = min(B, max(1, 128 // S))
        while B % bt:
            bt -= 1
    assert B % bt == 0
    nb = B // bt

    def wspec(shape):
        n = len(shape)
        return pl.BlockSpec((1,) + tuple(shape),
                            lambda i, l, _n=n: (l,) + (0,) * _n)

    in_specs = [
        pl.BlockSpec((bt * S, D), lambda i, l: (i, 0)),       # x (flattened rows)
        pl.BlockSpec((bt, 1, S), lambda i, l: (i, 0, 0)),     # mask
        wspec((D, D)), wspec((1, D)),                         # wq, bq
        wspec((D, D)), wspec((1, D)),                         # wk, bk
        wspec((D, D)), wspec((1, D)),                         # wv, bv
        wspec((D, D)), wspec((1, D)),                         # wo, bo
        wspec((1, D)), wspec((1, D)),                         # ln0 gamma, beta
        wspec((D, Dh)), wspec((1, Dh)),                       # w1, b1
        wspec((Dh, D)), wspec((1, D)),                        # w2, b2
        wspec((1, D)), wspec((1, D)),                         # ln1 gamma, beta
    ]

    kernel = functools.partial(encoder_stack_kernel,
                               num_heads=num_heads, bt=bt, seq=S)
    out_flat = pl.pallas_call(
        kernel,
        out_shape=jax.ShapeDtypeStruct((B * S, D), jnp.float32),
        grid=(nb, L),
        in_specs=in_specs,
        out_specs=pl.BlockSpec((bt * S, D), lambda i, l: (i, 0)),
        compiler_params=pltpu.CompilerParams(
            dimension_semantics=("parallel", "arbitrary"),
            vmem_limit_bytes=32 * 1024 * 1024),
    )(x_flat, mask3,
      params["wq"], params["bq"], params["wk"], params["bk"],
      params["wv"], params["bv"], params["wo"], params["bo"],
      params["g0"], params["be0"], params["w1"], params["b1"],
      params["w2"], params["b2"], params["g1"], params["be1"])
    return out_flat.reshape(B, S, D)


if __name__ == "__main__":
    # Small but lane-dense demo shapes: d_model=128 (multiple of 128 lanes).
    vocab, B, S, D, H, Dh, n_layers = 50, 2, 8, 128, 4, 256, 2

    key = jax.random.PRNGKey(0)
    k_tok, k_emb, k_par = jax.random.split(key, 3)

    token_ids = jax.random.randint(k_tok, (B, S), 0, vocab)
    # mask: 1.0 = attend, 0.0 = padding (second sequence has 2 padded positions)
    mask = jnp.array([[1.0] * S, [1.0] * (S - 2) + [0.0] * 2], dtype=jnp.float32)

    emb_table = jax.random.normal(k_emb, (vocab, D), jnp.float32) * 0.02
    params = init_params(k_par, n_layers, D, Dh)

    out = encoder_forward(token_ids, mask, emb_table, params, H)
    jax.block_until_ready(out)
    assert out.shape == (B, S, D)
    assert bool(jnp.all(jnp.isfinite(out)))
    print("KERNEL_OK")
</pallas_src>

<mosaic_0001>
module attributes {stable_mosaic.version = 11 : i64} {
  func.func @encoder_stack_kernel(%arg0: i32, %arg1: i32, %arg2: memref<16x128xf32, #tpu.memory_space<vmem>>, %arg3: memref<2x1x8xf32, #tpu.memory_space<vmem>>, %arg4: memref<1x128x128xbf16, #tpu.memory_space<vmem>>, %arg5: memref<1x1x128xf32, #tpu.memory_space<vmem>>, %arg6: memref<1x128x128xbf16, #tpu.memory_space<vmem>>, %arg7: memref<1x1x128xf32, #tpu.memory_space<vmem>>, %arg8: memref<1x128x128xbf16, #tpu.memory_space<vmem>>, %arg9: memref<1x1x128xf32, #tpu.memory_space<vmem>>, %arg10: memref<1x128x128xbf16, #tpu.memory_space<vmem>>, %arg11: memref<1x1x128xf32, #tpu.memory_space<vmem>>, %arg12: memref<1x1x128xf32, #tpu.memory_space<vmem>>, %arg13: memref<1x1x128xf32, #tpu.memory_space<vmem>>, %arg14: memref<1x128x256xbf16, #tpu.memory_space<vmem>>, %arg15: memref<1x1x256xf32, #tpu.memory_space<vmem>>, %arg16: memref<1x256x128xbf16, #tpu.memory_space<vmem>>, %arg17: memref<1x1x128xf32, #tpu.memory_space<vmem>>, %arg18: memref<1x1x128xf32, #tpu.memory_space<vmem>>, %arg19: memref<1x1x128xf32, #tpu.memory_space<vmem>>, %arg20: memref<16x128xf32, #tpu.memory_space<vmem>>) attributes {dimension_semantics = [#tpu.dimension_semantics<parallel>, #tpu.dimension_semantics<arbitrary>], iteration_bounds = array<i64: 1, 2>, scalar_prefetch = 0 : i64, scratch_operands = 0 : i64, tpu.core_type = #tpu.core_type<tc>, window_params = [{transform_indices = @transform_0, window_bounds = array<i64: 16, 128>}, {transform_indices = @transform_1, window_bounds = array<i64: 2, 1, 8>}, {transform_indices = @transform_2, window_bounds = array<i64: 1, 128, 128>}, {transform_indices = @transform_3, window_bounds = array<i64: 1, 1, 128>}, {transform_indices = @transform_4, window_bounds = array<i64: 1, 128, 128>}, {transform_indices = @transform_5, window_bounds = array<i64: 1, 1, 128>}, {transform_indices = @transform_6, window_bounds = array<i64: 1, 128, 128>}, {transform_indices = @transform_7, window_bounds = array<i64: 1, 1, 128>}, {transform_indices = @transform_8, window_bounds = array<i64: 1, 128, 128>}, {transform_indices = @transform_9, window_bounds = array<i64: 1, 1, 128>}, {transform_indices = @transform_10, window_bounds = array<i64: 1, 1, 128>}, {transform_indices = @transform_11, window_bounds = array<i64: 1, 1, 128>}, {transform_indices = @transform_12, window_bounds = array<i64: 1, 128, 256>}, {transform_indices = @transform_13, window_bounds = array<i64: 1, 1, 256>}, {transform_indices = @transform_14, window_bounds = array<i64: 1, 256, 128>}, {transform_indices = @transform_15, window_bounds = array<i64: 1, 1, 128>}, {transform_indices = @transform_16, window_bounds = array<i64: 1, 1, 128>}, {transform_indices = @transform_17, window_bounds = array<i64: 1, 1, 128>}, {transform_indices = @transform_18, window_bounds = array<i64: 16, 128>}]} {
    %c0_i32 = arith.constant 0 : i32
    %0 = arith.cmpi eq, %arg1, %c0_i32 : i32
    %1 = arith.extui %0 : i1 to i32
    %c0_i32_0 = arith.constant 0 : i32
    %2 = arith.cmpi ne, %1, %c0_i32_0 : i32
    scf.if %2 {
      %c0_94 = arith.constant 0 : index
      %c0_95 = arith.constant 0 : index
      %229 = vector.load %arg2[%c0_94, %c0_95] : memref<16x128xf32, #tpu.memory_space<vmem>>, vector<16x128xf32>
      %c0_96 = arith.constant 0 : index
      %c0_97 = arith.constant 0 : index
      %230 = vector.load %arg20[%c0_96, %c0_97] : memref<16x128xf32, #tpu.memory_space<vmem>>, vector<16x128xf32>
      tpu.vector_store %arg20[%c0_96, %c0_97], %229 {strides = array<i32>} : memref<16x128xf32, #tpu.memory_space<vmem>>, vector<16x128xf32>,
    } else {
    }
    %c0 = arith.constant 0 : index
    %c0_1 = arith.constant 0 : index
    %3 = vector.load %arg20[%c0, %c0_1] : memref<16x128xf32, #tpu.memory_space<vmem>>, vector<16x128xf32>
    %c0_2 = arith.constant 0 : index
    %c0_3 = arith.constant 0 : index
    %c0_4 = arith.constant 0 : index
    %4 = vector.load %arg3[%c0_2, %c0_3, %c0_4] : memref<2x1x8xf32, #tpu.memory_space<vmem>>, vector<2x1x8xf32>
    %cst = arith.constant 1.000000e+00 : f32
    %5 = vector.broadcast %cst : f32 to vector<2x1x8xf32>
    %6 = arith.subf %5, %4 : vector<2x1x8xf32>
    %cst_5 = arith.constant -1.000000e+09 : f32
    %7 = vector.broadcast %cst_5 : f32 to vector<2x1x8xf32>
    %8 = arith.mulf %6, %7 : vector<2x1x8xf32>
    %9 = arith.truncf %3 : vector<16x128xf32> to vector<16x128xbf16>
    %c0_6 = arith.constant 0 : index
    %c0_7 = arith.constant 0 : index
    %c0_8 = arith.constant 0 : index
    %10 = vector.load %arg4[%c0_6, %c0_7, %c0_8] : memref<1x128x128xbf16, #tpu.memory_space<vmem>>, vector<1x128x128xbf16>
    %11 = vector.shape_cast %10 : vector<1x128x128xbf16> to vector<128x128xbf16>
    %c0_9 = arith.constant 0 : index
    %c0_10 = arith.constant 0 : index
    %c0_11 = arith.constant 0 : index
    %12 = vector.load %arg6[%c0_9, %c0_10, %c0_11] : memref<1x128x128xbf16, #tpu.memory_space<vmem>>, vector<1x128x128xbf16>
    %13 = vector.shape_cast %12 : vector<1x128x128xbf16> to vector<128x128xbf16>
    %c0_12 = arith.constant 0 : index
    %c0_13 = arith.constant 0 : index
    %c0_14 = arith.constant 0 : index
    %14 = vector.load %arg8[%c0_12, %c0_13, %c0_14] : memref<1x128x128xbf16, #tpu.memory_space<vmem>>, vector<1x128x128xbf16>
    %15 = vector.shape_cast %14 : vector<1x128x128xbf16> to vector<128x128xbf16>
    %c0_15 = arith.constant 0 : index
    %c0_16 = arith.constant 0 : index
    %c0_17 = arith.constant 0 : index
    %16 = vector.load %arg10[%c0_15, %c0_16, %c0_17] : memref<1x128x128xbf16, #tpu.memory_space<vmem>>, vector<1x128x128xbf16>
    %17 = vector.shape_cast %16 : vector<1x128x128xbf16> to vector<128x128xbf16>
    %cst_18 = arith.constant dense<0.000000e+00> : vector<16x128xf32>
    %18 = tpu.matmul %9, %11, %cst_18 {dimension_numbers = #tpu.dot_dimension_numbers<[1], [0], [0], [1], [0, 0, 1, 1], [], []>} : vector<16x128xbf16>, vector<128x128xbf16>, vector<16x128xf32> -> vector<16x128xf32>
    %c0_19 = arith.constant 0 : index
    %c0_20 = arith.constant 0 : index
    %c0_21 = arith.constant 0 : index
    %19 = vector.load %arg5[%c0_19, %c0_20, %c0_21] : memref<1x1x128xf32, #tpu.memory_space<vmem>>, vector<1x1x128xf32>
    %20 = vector.shape_cast %19 : vector<1x1x128xf32> to vector<1x128xf32>
    %21 = vector.broadcast %20 : vector<1x128xf32> to vector<16x128xf32>
    %22 = arith.addf %18, %21 : vector<16x128xf32>
    %cst_22 = arith.constant dense<0.000000e+00> : vector<16x128xf32>
    %23 = tpu.matmul %9, %13, %cst_22 {dimension_numbers = #tpu.dot_dimension_numbers<[1], [0], [0], [1], [0, 0, 1, 1], [], []>} : vector<16x128xbf16>, vector<128x128xbf16>, vector<16x128xf32> -> vector<16x128xf32>
    %c0_23 = arith.constant 0 : index
    %c0_24 = arith.constant 0 : index
    %c0_25 = arith.constant 0 : index
    %24 = vector.load %arg7[%c0_23, %c0_24, %c0_25] : memref<1x1x128xf32, #tpu.memory_space<vmem>>, vector<1x1x128xf32>
    %25 = vector.shape_cast %24 : vector<1x1x128xf32> to vector<1x128xf32>
    %26 = vector.broadcast %25 : vector<1x128xf32> to vector<16x128xf32>
    %27 = arith.addf %23, %26 : vector<16x128xf32>
    %cst_26 = arith.constant dense<0.000000e+00> : vector<16x128xf32>
    %28 = tpu.matmul %9, %15, %cst_26 {dimension_numbers = #tpu.dot_dimension_numbers<[1], [0], [0], [1], [0, 0, 1, 1], [], []>} : vector<16x128xbf16>, vector<128x128xbf16>, vector<16x128xf32> -> vector<16x128xf32>
    %c0_27 = arith.constant 0 : index
    %c0_28 = arith.constant 0 : index
    %c0_29 = arith.constant 0 : index
    %29 = vector.load %arg9[%c0_27, %c0_28, %c0_29] : memref<1x1x128xf32, #tpu.memory_space<vmem>>, vector<1x1x128xf32>
    %30 = vector.shape_cast %29 : vector<1x1x128xf32> to vector<1x128xf32>
    %31 = vector.broadcast %30 : vector<1x128xf32> to vector<16x128xf32>
    %32 = arith.addf %28, %31 : vector<16x128xf32>
    %cst_30 = arith.constant 0.176776692 : f32
    %33 = vector.broadcast %cst_30 : f32 to vector<16x128xf32>
    %34 = arith.mulf %22, %33 : vector<16x128xf32>
    %cst_31 = arith.constant 0.000000e+00 : f32
    %35 = vector.broadcast %cst_31 : f32 to vector<16x128xf32>
    %36 = vector.extract_strided_slice %34 {offsets = [0, 0], sizes = [16, 32], strides = [1, 1]} : vector<16x128xf32> to vector<16x32xf32>
    %37 = vector.shape_cast %36 : vector<16x32xf32> to vector<2x8x32xf32>
    %38 = arith.truncf %37 : vector<2x8x32xf32> to vector<2x8x32xbf16>
    %39 = vector.extract_strided_slice %27 {offsets = [0, 0], sizes = [16, 32], strides = [1, 1]} : vector<16x128xf32> to vector<16x32xf32>
    %40 = vector.shape_cast %39 : vector<16x32xf32> to vector<2x8x32xf32>
    %41 = arith.truncf %40 : vector<2x8x32xf32> to vector<2x8x32xbf16>
    %42 = vector.extract_strided_slice %32 {offsets = [0, 0], sizes = [16, 32], strides = [1, 1]} : vector<16x128xf32> to vector<16x32xf32>
    %43 = vector.shape_cast %42 : vector<16x32xf32> to vector<2x8x32xf32>
    %44 = arith.truncf %43 : vector<2x8x32xf32> to vector<2x8x32xbf16>
    "tpu.trace_start"() <{level = 10 : i32, message = "bqd,bkd->bqk"}> : () -> ()
    %cst_32 = arith.constant dense<0.000000e+00> : vector<2x8x8xf32>
    %45 = tpu.matmul %38, %41, %cst_32 {dimension_numbers = #tpu.dot_dimension_numbers<[2], [2], [1], [1], [0, 0, 0, 1, 1, 1], [0], [0]>} : vector<2x8x32xbf16>, vector<2x8x32xbf16>, vector<2x8x8xf32> -> vector<2x8x8xf32>
    "tpu.trace_stop"() : () -> ()
    %46 = vector.broadcast %8 : vector<2x1x8xf32> to vector<2x8x8xf32>
    %47 = arith.addf %45, %46 : vector<2x8x8xf32>
    %cst_33 = arith.constant dense<0xFF800000> : vector<2x8xf32>
    %48 = vector.multi_reduction <maximumf>, %47, %cst_33 [2] : vector<2x8x8xf32> to vector<2x8xf32>
    %49 = vector.shape_cast %48 : vector<2x8xf32> to vector<2x8x1xf32>
    %50 = vector.broadcast %49 : vector<2x8x1xf32> to vector<2x8x8xf32>
    %51 = arith.subf %47, %50 : vector<2x8x8xf32>
    %52 = math.exp %51 : vector<2x8x8xf32>
    %cst_34 = arith.constant dense<0.000000e+00> : vector<2x8xf32>
    %53 = vector.multi_reduction <add>, %52, %cst_34 [2] : vector<2x8x8xf32> to vector<2x8xf32>
    %54 = vector.shape_cast %53 : vector<2x8xf32> to vector<2x8x1xf32>
    %55 = tpu.reciprocal %54 {approx = true} : vector<2x8x1xf32> -> vector<2x8x1xf32>
    %56 = vector.broadcast %55 : vector<2x8x1xf32> to vector<2x8x8xf32>
    %57 = arith.mulf %52, %56 : vector<2x8x8xf32>
    %58 = arith.truncf %57 : vector<2x8x8xf32> to vector<2x8x8xbf16>
    "tpu.trace_start"() <{level = 10 : i32, message = "bqk,bkd->bqd"}> : () -> ()
    %cst_35 = arith.constant dense<0.000000e+00> : vector<2x8x32xf32>
    %59 = tpu.matmul %58, %44, %cst_35 {dimension_numbers = #tpu.dot_dimension_numbers<[2], [1], [1], [2], [0, 0, 0, 1, 1, 2], [0], [0]>} : vector<2x8x8xbf16>, vector<2x8x32xbf16>, vector<2x8x32xf32> -> vector<2x8x32xf32>
    "tpu.trace_stop"() : () -> ()
    %60 = vector.shape_cast %59 : vector<2x8x32xf32> to vector<16x32xf32>
    %61 = arith.truncf %60 : vector<16x32xf32> to vector<16x32xbf16>
    %62 = vector.extract_strided_slice %17 {offsets = [0, 0], sizes = [32, 128], strides = [1, 1]} : vector<128x128xbf16> to vector<32x128xbf16>
    %cst_36 = arith.constant dense<0.000000e+00> : vector<16x128xf32>
    %63 = tpu.matmul %61, %62, %cst_36 {dimension_numbers = #tpu.dot_dimension_numbers<[1], [0], [0], [1], [0, 0, 1, 1], [], []>} : vector<16x32xbf16>, vector<32x128xbf16>, vector<16x128xf32> -> vector<16x128xf32>
    %64 = arith.addf %35, %63 : vector<16x128xf32>
    %65 = vector.extract_strided_slice %34 {offsets = [0, 32], sizes = [16, 32], strides = [1, 1]} : vector<16x128xf32> to vector<16x32xf32>
    %66 = vector.shape_cast %65 : vector<16x32xf32> to vector<2x8x32xf32>
    %67 = arith.truncf %66 : vector<2x8x32xf32> to vector<2x8x32xbf16>
    %68 = vector.extract_strided_slice %27 {offsets = [0, 32], sizes = [16, 32], strides = [1, 1]} : vector<16x128xf32> to vector<16x32xf32>
    %69 = vector.shape_cast %68 : vector<16x32xf32> to vector<2x8x32xf32>
    %70 = arith.truncf %69 : vector<2x8x32xf32> to vector<2x8x32xbf16>
    %71 = vector.extract_strided_slice %32 {offsets = [0, 32], sizes = [16, 32], strides = [1, 1]} : vector<16x128xf32> to vector<16x32xf32>
    %72 = vector.shape_cast %71 : vector<16x32xf32> to vector<2x8x32xf32>
    %73 = arith.truncf %72 : vector<2x8x32xf32> to vector<2x8x32xbf16>
    "tpu.trace_start"() <{level = 10 : i32, message = "bqd,bkd->bqk"}> : () -> ()
    %cst_37 = arith.constant dense<0.000000e+00> : vector<2x8x8xf32>
    %74 = tpu.matmul %67, %70, %cst_37 {dimension_numbers = #tpu.dot_dimension_numbers<[2], [2], [1], [1], [0, 0, 0, 1, 1, 1], [0], [0]>} : vector<2x8x32xbf16>, vector<2x8x32xbf16>, vector<2x8x8xf32> -> vector<2x8x8xf32>
    "tpu.trace_stop"() : () -> ()
    %75 = vector.broadcast %8 : vector<2x1x8xf32> to vector<2x8x8xf32>
    %76 = arith.addf %74, %75 : vector<2x8x8xf32>
    %cst_38 = arith.constant dense<0xFF800000> : vector<2x8xf32>
    %77 = vector.multi_reduction <maximumf>, %76, %cst_38 [2] : vector<2x8x8xf32> to vector<2x8xf32>
    %78 = vector.shape_cast %77 : vector<2x8xf32> to vector<2x8x1xf32>
    %79 = vector.broadcast %78 : vector<2x8x1xf32> to vector<2x8x8xf32>
    %80 = arith.subf %76, %79 : vector<2x8x8xf32>
    %81 = math.exp %80 : vector<2x8x8xf32>
    %cst_39 = arith.constant dense<0.000000e+00> : vector<2x8xf32>
    %82 = vector.multi_reduction <add>, %81, %cst_39 [2] : vector<2x8x8xf32> to vector<2x8xf32>
    %83 = vector.shape_cast %82 : vector<2x8xf32> to vector<2x8x1xf32>
    %84 = tpu.reciprocal %83 {approx = true} : vector<2x8x1xf32> -> vector<2x8x1xf32>
    %85 = vector.broadcast %84 : vector<2x8x1xf32> to vector<2x8x8xf32>
    %86 = arith.mulf %81, %85 : vector<2x8x8xf32>
    %87 = arith.truncf %86 : vector<2x8x8xf32> to vector<2x8x8xbf16>
    "tpu.trace_start"() <{level = 10 : i32, message = "bqk,bkd->bqd"}> : () -> ()
    %cst_40 = arith.constant dense<0.000000e+00> : vector<2x8x32xf32>
    %88 = tpu.matmul %87, %73, %cst_40 {dimension_numbers = #tpu.dot_dimension_numbers<[2], [1], [1], [2], [0, 0, 0, 1, 1, 2], [0], [0]>} : vector<2x8x8xbf16>, vector<2x8x32xbf16>, vector<2x8x32xf32> -> vector<2x8x32xf32>
    "tpu.trace_stop"() : () -> ()
    %89 = vector.shape_cast %88 : vector<2x8x32xf32> to vector<16x32xf32>
    %90 = arith.truncf %89 : vector<16x32xf32> to vector<16x32xbf16>
    %91 = vector.extract_strided_slice %17 {offsets = [32, 0], sizes = [32, 128], strides = [1, 1]} : vector<128x128xbf16> to vector<32x128xbf16>
    %cst_41 = arith.constant dense<0.000000e+00> : vector<16x128xf32>
    %92 = tpu.matmul %90, %91, %cst_41 {dimension_numbers = #tpu.dot_dimension_numbers<[1], [0], [0], [1], [0, 0, 1, 1], [], []>} : vector<16x32xbf16>, vector<32x128xbf16>, vector<16x128xf32> -> vector<16x128xf32>
    %93 = arith.addf %64, %92 : vector<16x128xf32>
    %94 = vector.extract_strided_slice %34 {offsets = [0, 64], sizes = [16, 32], strides = [1, 1]} : vector<16x128xf32> to vector<16x32xf32>
    %95 = vector.shape_cast %94 : vector<16x32xf32> to vector<2x8x32xf32>
    %96 = arith.truncf %95 : vector<2x8x32xf32> to vector<2x8x32xbf16>
    %97 = vector.extract_strided_slice %27 {offsets = [0, 64], sizes = [16, 32], strides = [1, 1]} : vector<16x128xf32> to vector<16x32xf32>
    %98 = vector.shape_cast %97 : vector<16x32xf32> to vector<2x8x32xf32>
    %99 = arith.truncf %98 : vector<2x8x32xf32> to vector<2x8x32xbf16>
    %100 = vector.extract_strided_slice %32 {offsets = [0, 64], sizes = [16, 32], strides = [1, 1]} : vector<16x128xf32> to vector<16x32xf32>
    %101 = vector.shape_cast %100 : vector<16x32xf32> to vector<2x8x32xf32>
    %102 = arith.truncf %101 : vector<2x8x32xf32> to vector<2x8x32xbf16>
    "tpu.trace_start"() <{level = 10 : i32, message = "bqd,bkd->bqk"}> : () -> ()
    %cst_42 = arith.constant dense<0.000000e+00> : vector<2x8x8xf32>
    %103 = tpu.matmul %96, %99, %cst_42 {dimension_numbers = #tpu.dot_dimension_numbers<[2], [2], [1], [1], [0, 0, 0, 1, 1, 1], [0], [0]>} : vector<2x8x32xbf16>, vector<2x8x32xbf16>, vector<2x8x8xf32> -> vector<2x8x8xf32>
    "tpu.trace_stop"() : () -> ()
    %104 = vector.broadcast %8 : vector<2x1x8xf32> to vector<2x8x8xf32>
    %105 = arith.addf %103, %104 : vector<2x8x8xf32>
    %cst_43 = arith.constant dense<0xFF800000> : vector<2x8xf32>
    %106 = vector.multi_reduction <maximumf>, %105, %cst_43 [2] : vector<2x8x8xf32> to vector<2x8xf32>
    %107 = vector.shape_cast %106 : vector<2x8xf32> to vector<2x8x1xf32>
    %108 = vector.broadcast %107 : vector<2x8x1xf32> to vector<2x8x8xf32>
    %109 = arith.subf %105, %108 : vector<2x8x8xf32>
    %110 = math.exp %109 : vector<2x8x8xf32>
    %cst_44 = arith.constant dense<0.000000e+00> : vector<2x8xf32>
    %111 = vector.multi_reduction <add>, %110, %cst_44 [2] : vector<2x8x8xf32> to vector<2x8xf32>
    %112 = vector.shape_cast %111 : vector<2x8xf32> to vector<2x8x1xf32>
    %113 = tpu.reciprocal %112 {approx = true} : vector<2x8x1xf32> -> vector<2x8x1xf32>
    %114 = vector.broadcast %113 : vector<2x8x1xf32> to vector<2x8x8xf32>
    %115 = arith.mulf %110, %114 : vector<2x8x8xf32>
    %116 = arith.truncf %115 : vector<2x8x8xf32> to vector<2x8x8xbf16>
    "tpu.trace_start"() <{level = 10 : i32, message = "bqk,bkd->bqd"}> : () -> ()
    %cst_45 = arith.constant dense<0.000000e+00> : vector<2x8x32xf32>
    %117 = tpu.matmul %116, %102, %cst_45 {dimension_numbers = #tpu.dot_dimension_numbers<[2], [1], [1], [2], [0, 0, 0, 1, 1, 2], [0], [0]>} : vector<2x8x8xbf16>, vector<2x8x32xbf16>, vector<2x8x32xf32> -> vector<2x8x32xf32>
    "tpu.trace_stop"() : () -> ()
    %118 = vector.shape_cast %117 : vector<2x8x32xf32> to vector<16x32xf32>
    %119 = arith.truncf %118 : vector<16x32xf32> to vector<16x32xbf16>
    %120 = vector.extract_strided_slice %17 {offsets = [64, 0], sizes = [32, 128], strides = [1, 1]} : vector<128x128xbf16> to vector<32x128xbf16>
    %cst_46 = arith.constant dense<0.000000e+00> : vector<16x128xf32>
    %121 = tpu.matmul %119, %120, %cst_46 {dimension_numbers = #tpu.dot_dimension_numbers<[1], [0], [0], [1], [0, 0, 1, 1], [], []>} : vector<16x32xbf16>, vector<32x128xbf16>, vector<16x128xf32> -> vector<16x128xf32>
    %122 = arith.addf %93, %121 : vector<16x128xf32>
    %123 = vector.extract_strided_slice %34 {offsets = [0, 96], sizes = [16, 32], strides = [1, 1]} : vector<16x128xf32> to vector<16x32xf32>
    %124 = vector.shape_cast %123 : vector<16x32xf32> to vector<2x8x32xf32>
    %125 = arith.truncf %124 : vector<2x8x32xf32> to vector<2x8x32xbf16>
    %126 = vector.extract_strided_slice %27 {offsets = [0, 96], sizes = [16, 32], strides = [1, 1]} : vector<16x128xf32> to vector<16x32xf32>
    %127 = vector.shape_cast %126 : vector<16x32xf32> to vector<2x8x32xf32>
    %128 = arith.truncf %127 : vector<2x8x32xf32> to vector<2x8x32xbf16>
    %129 = vector.extract_strided_slice %32 {offsets = [0, 96], sizes = [16, 32], strides = [1, 1]} : vector<16x128xf32> to vector<16x32xf32>
    %130 = vector.shape_cast %129 : vector<16x32xf32> to vector<2x8x32xf32>
    %131 = arith.truncf %130 : vector<2x8x32xf32> to vector<2x8x32xbf16>
    "tpu.trace_start"() <{level = 10 : i32, message = "bqd,bkd->bqk"}> : () -> ()
    %cst_47 = arith.constant dense<0.000000e+00> : vector<2x8x8xf32>
    %132 = tpu.matmul %125, %128, %cst_47 {dimension_numbers = #tpu.dot_dimension_numbers<[2], [2], [1], [1], [0, 0, 0, 1, 1, 1], [0], [0]>} : vector<2x8x32xbf16>, vector<2x8x32xbf16>, vector<2x8x8xf32> -> vector<2x8x8xf32>
    "tpu.trace_stop"() : () -> ()
    %133 = vector.broadcast %8 : vector<2x1x8xf32> to vector<2x8x8xf32>
    %134 = arith.addf %132, %133 : vector<2x8x8xf32>
    %cst_48 = arith.constant dense<0xFF800000> : vector<2x8xf32>
    %135 = vector.multi_reduction <maximumf>, %134, %cst_48 [2] : vector<2x8x8xf32> to vector<2x8xf32>
    %136 = vector.shape_cast %135 : vector<2x8xf32> to vector<2x8x1xf32>
    %137 = vector.broadcast %136 : vector<2x8x1xf32> to vector<2x8x8xf32>
    %138 = arith.subf %134, %137 : vector<2x8x8xf32>
    %139 = math.exp %138 : vector<2x8x8xf32>
    %cst_49 = arith.constant dense<0.000000e+00> : vector<2x8xf32>
    %140 = vector.multi_reduction <add>, %139, %cst_49 [2] : vector<2x8x8xf32> to vector<2x8xf32>
    %141 = vector.shape_cast %140 : vector<2x8xf32> to vector<2x8x1xf32>
    %142 = tpu.reciprocal %141 {approx = true} : vector<2x8x1xf32> -> vector<2x8x1xf32>
    %143 = vector.broadcast %142 : vector<2x8x1xf32> to vector<2x8x8xf32>
    %144 = arith.mulf %139, %143 : vector<2x8x8xf32>
    %145 = arith.truncf %144 : vector<2x8x8xf32> to vector<2x8x8xbf16>
    "tpu.trace_start"() <{level = 10 : i32, message = "bqk,bkd->bqd"}> : () -> ()
    %cst_50 = arith.constant dense<0.000000e+00> : vector<2x8x32xf32>
    %146 = tpu.matmul %145, %131, %cst_50 {dimension_numbers = #tpu.dot_dimension_numbers<[2], [1], [1], [2], [0, 0, 0, 1, 1, 2], [0], [0]>} : vector<2x8x8xbf16>, vector<2x8x32xbf16>, vector<2x8x32xf32> -> vector<2x8x32xf32>
    "tpu.trace_stop"() : () -> ()
    %147 = vector.shape_cast %146 : vector<2x8x32xf32> to vector<16x32xf32>
    %148 = arith.truncf %147 : vector<16x32xf32> to vector<16x32xbf16>
    %149 = vector.extract_strided_slice %17 {offsets = [96, 0], sizes = [32, 128], strides = [1, 1]} : vector<128x128xbf16> to vector<32x128xbf16>
    %cst_51 = arith.constant dense<0.000000e+00> : vector<16x128xf32>
    %150 = tpu.matmul %148, %149, %cst_51 {dimension_numbers = #tpu.dot_dimension_numbers<[1], [0], [0], [1], [0, 0, 1, 1], [], []>} : vector<16x32xbf16>, vector<32x128xbf16>, vector<16x128xf32> -> vector<16x128xf32>
    %151 = arith.addf %122, %150 : vector<16x128xf32>
    %c0_52 = arith.constant 0 : index
    %c0_53 = arith.constant 0 : index
    %c0_54 = arith.constant 0 : index
    %152 = vector.load %arg11[%c0_52, %c0_53, %c0_54] : memref<1x1x128xf32, #tpu.memory_space<vmem>>, vector<1x1x128xf32>
    %153 = vector.shape_cast %152 : vector<1x1x128xf32> to vector<1x128xf32>
    %154 = vector.broadcast %153 : vector<1x128xf32> to vector<16x128xf32>
    %155 = arith.addf %151, %154 : vector<16x128xf32>
    %156 = arith.addf %155, %3 : vector<16x128xf32>
    %c0_55 = arith.constant 0 : index
    %c0_56 = arith.constant 0 : index
    %c0_57 = arith.constant 0 : index
    %157 = vector.load %arg12[%c0_55, %c0_56, %c0_57] : memref<1x1x128xf32, #tpu.memory_space<vmem>>, vector<1x1x128xf32>
    %158 = vector.shape_cast %157 : vector<1x1x128xf32> to vector<1x128xf32>
    %c0_58 = arith.constant 0 : index
    %c0_59 = arith.constant 0 : index
    %c0_60 = arith.constant 0 : index
    %159 = vector.load %arg13[%c0_58, %c0_59, %c0_60] : memref<1x1x128xf32, #tpu.memory_space<vmem>>, vector<1x1x128xf32>
    %160 = vector.shape_cast %159 : vector<1x1x128xf32> to vector<1x128xf32>
    %cst_61 = arith.constant dense<0.000000e+00> : vector<16xf32>
    %161 = vector.multi_reduction <add>, %156, %cst_61 [1] : vector<16x128xf32> to vector<16xf32>
    %162 = vector.shape_cast %161 : vector<16xf32> to vector<16x1xf32>
    %cst_62 = arith.constant 1.280000e+02 : f32
    %163 = vector.broadcast %cst_62 : f32 to vector<16x1xf32>
    %164 = arith.divf %162, %163 : vector<16x1xf32>
    %165 = vector.broadcast %164 : vector<16x1xf32> to vector<16x128xf32>
    %166 = arith.subf %156, %165 : vector<16x128xf32>
    %167 = arith.mulf %166, %166 : vector<16x128xf32>
    %cst_63 = arith.constant dense<0.000000e+00> : vector<16xf32>
    %168 = vector.multi_reduction <add>, %167, %cst_63 [1] : vector<16x128xf32> to vector<16xf32>
    %169 = vector.shape_cast %168 : vector<16xf32> to vector<16x1xf32>
    %cst_64 = arith.constant 1.280000e+02 : f32
    %170 = vector.broadcast %cst_64 : f32 to vector<16x1xf32>
    %171 = arith.divf %169, %170 : vector<16x1xf32>
    %172 = vector.broadcast %164 : vector<16x1xf32> to vector<16x128xf32>
    %173 = arith.subf %156, %172 : vector<16x128xf32>
    %cst_65 = arith.constant 9.99999997E-7 : f32
    %174 = vector.broadcast %cst_65 : f32 to vector<16x1xf32>
    %175 = arith.addf %171, %174 : vector<16x1xf32>
    %176 = math.rsqrt %175 : vector<16x1xf32>
    %177 = vector.broadcast %176 : vector<16x1xf32> to vector<16x128xf32>
    %178 = arith.mulf %173, %177 : vector<16x128xf32>
    %179 = vector.broadcast %158 : vector<1x128xf32> to vector<16x128xf32>
    %180 = arith.mulf %178, %179 : vector<16x128xf32>
    %181 = vector.broadcast %160 : vector<1x128xf32> to vector<16x128xf32>
    %182 = arith.addf %180, %181 : vector<16x128xf32>
    %183 = arith.truncf %182 : vector<16x128xf32> to vector<16x128xbf16>
    %c0_66 = arith.constant 0 : index
    %c0_67 = arith.constant 0 : index
    %c0_68 = arith.constant 0 : index
    %184 = vector.load %arg14[%c0_66, %c0_67, %c0_68] : memref<1x128x256xbf16, #tpu.memory_space<vmem>>, vector<1x128x256xbf16>
    %185 = vector.shape_cast %184 : vector<1x128x256xbf16> to vector<128x256xbf16>
    %cst_69 = arith.constant dense<0.000000e+00> : vector<16x256xf32>
    %186 = tpu.matmul %183, %185, %cst_69 {dimension_numbers = #tpu.dot_dimension_numbers<[1], [0], [0], [1], [0, 0, 1, 1], [], []>} : vector<16x128xbf16>, vector<128x256xbf16>, vector<16x256xf32> -> vector<16x256xf32>
    %c0_70 = arith.constant 0 : index
    %c0_71 = arith.constant 0 : index
    %c0_72 = arith.constant 0 : index
    %187 = vector.load %arg15[%c0_70, %c0_71, %c0_72] : memref<1x1x256xf32, #tpu.memory_space<vmem>>, vector<1x1x256xf32>
    %188 = vector.shape_cast %187 : vector<1x1x256xf32> to vector<1x256xf32>
    %189 = vector.broadcast %188 : vector<1x256xf32> to vector<16x256xf32>
    %190 = arith.addf %186, %189 : vector<16x256xf32>
    %cst_73 = arith.constant 0.000000e+00 : f32
    %191 = vector.broadcast %cst_73 : f32 to vector<16x256xf32>
    %192 = arith.maximumf %190, %191 : vector<16x256xf32>
    %193 = arith.truncf %192 : vector<16x256xf32> to vector<16x256xbf16>
    %c0_74 = arith.constant 0 : index
    %c0_75 = arith.constant 0 : index
    %c0_76 = arith.constant 0 : index
    %194 = vector.load %arg16[%c0_74, %c0_75, %c0_76] : memref<1x256x128xbf16, #tpu.memory_space<vmem>>, vector<1x256x128xbf16>
    %195 = vector.shape_cast %194 : vector<1x256x128xbf16> to vector<256x128xbf16>
    %cst_77 = arith.constant dense<0.000000e+00> : vector<16x128xf32>
    %196 = tpu.matmul %193, %195, %cst_77 {dimension_numbers = #tpu.dot_dimension_numbers<[1], [0], [0], [1], [0, 0, 1, 1], [], []>} : vector<16x256xbf16>, vector<256x128xbf16>, vector<16x128xf32> -> vector<16x128xf32>
    %c0_78 = arith.constant 0 : index
    %c0_79 = arith.constant 0 : index
    %c0_80 = arith.constant 0 : index
    %197 = vector.load %arg17[%c0_78, %c0_79, %c0_80] : memref<1x1x128xf32, #tpu.memory_space<vmem>>, vector<1x1x128xf32>
    %198 = vector.shape_cast %197 : vector<1x1x128xf32> to vector<1x128xf32>
    %199 = vector.broadcast %198 : vector<1x128xf32> to vector<16x128xf32>
    %200 = arith.addf %196, %199 : vector<16x128xf32>
    %201 = arith.addf %200, %182 : vector<16x128xf32>
    %c0_81 = arith.constant 0 : index
    %c0_82 = arith.constant 0 : index
    %c0_83 = arith.constant 0 : index
    %202 = vector.load %arg18[%c0_81, %c0_82, %c0_83] : memref<1x1x128xf32, #tpu.memory_space<vmem>>, vector<1x1x128xf32>
    %203 = vector.shape_cast %202 : vector<1x1x128xf32> to vector<1x128xf32>
    %c0_84 = arith.constant 0 : index
    %c0_85 = arith.constant 0 : index
    %c0_86 = arith.constant 0 : index
    %204 = vector.load %arg19[%c0_84, %c0_85, %c0_86] : memref<1x1x128xf32, #tpu.memory_space<vmem>>, vector<1x1x128xf32>
    %205 = vector.shape_cast %204 : vector<1x1x128xf32> to vector<1x128xf32>
    %cst_87 = arith.constant dense<0.000000e+00> : vector<16xf32>
    %206 = vector.multi_reduction <add>, %201, %cst_87 [1] : vector<16x128xf32> to vector<16xf32>
    %207 = vector.shape_cast %206 : vector<16xf32> to vector<16x1xf32>
    %cst_88 = arith.constant 1.280000e+02 : f32
    %208 = vector.broadcast %cst_88 : f32 to vector<16x1xf32>
    %209 = arith.divf %207, %208 : vector<16x1xf32>
    %210 = vector.broadcast %209 : vector<16x1xf32> to vector<16x128xf32>
    %211 = arith.subf %201, %210 : vector<16x128xf32>
    %212 = arith.mulf %211, %211 : vector<16x128xf32>
    %cst_89 = arith.constant dense<0.000000e+00> : vector<16xf32>
    %213 = vector.multi_reduction <add>, %212, %cst_89 [1] : vector<16x128xf32> to vector<16xf32>
    %214 = vector.shape_cast %213 : vector<16xf32> to vector<16x1xf32>
    %cst_90 = arith.constant 1.280000e+02 : f32
    %215 = vector.broadcast %cst_90 : f32 to vector<16x1xf32>
    %216 = arith.divf %214, %215 : vector<16x1xf32>
    %217 = vector.broadcast %209 : vector<16x1xf32> to vector<16x128xf32>
    %218 = arith.subf %201, %217 : vector<16x128xf32>
    %cst_91 = arith.constant 9.99999997E-7 : f32
    %219 = vector.broadcast %cst_91 : f32 to vector<16x1xf32>
    %220 = arith.addf %216, %219 : vector<16x1xf32>
    %221 = math.rsqrt %220 : vector<16x1xf32>
    %222 = vector.broadcast %221 : vector<16x1xf32> to vector<16x128xf32>
    %223 = arith.mulf %218, %222 : vector<16x128xf32>
    %224 = vector.broadcast %203 : vector<1x128xf32> to vector<16x128xf32>
    %225 = arith.mulf %223, %224 : vector<16x128xf32>
    %226 = vector.broadcast %205 : vector<1x128xf32> to vector<16x128xf32>
    %227 = arith.addf %225, %226 : vector<16x128xf32>
    %c0_92 = arith.constant 0 : index
    %c0_93 = arith.constant 0 : index
    %228 = vector.load %arg20[%c0_92, %c0_93] : memref<16x128xf32, #tpu.memory_space<vmem>>, vector<16x128xf32>
    tpu.vector_store %arg20[%c0_92, %c0_93], %227 {strides = array<i32>} : memref<16x128xf32, #tpu.memory_space<vmem>>, vector<16x128xf32>,
    return
  }
  func.func @transform_0(%arg0: i32, %arg1: i32) -> (i32, i32) {
    %c0_i32 = arith.constant 0 : i32
    %c0_i32_0 = arith.constant 0 : i32
    return %arg0, %c0_i32 : i32, i32
  }
  func.func @transform_1(%arg0: i32, %arg1: i32) -> (i32, i32, i32) {
    %c0_i32 = arith.constant 0 : i32
    %c0_i32_0 = arith.constant 0 : i32
    %c0_i32_1 = arith.constant 0 : i32
    return %arg0, %c0_i32, %c0_i32_0 : i32, i32, i32
  }
  func.func @transform_2(%arg0: i32, %arg1: i32) -> (i32, i32, i32) {
    %c0_i32 = arith.constant 0 : i32
    %c0_i32_0 = arith.constant 0 : i32
    %c0_i32_1 = arith.constant 0 : i32
    return %arg1, %c0_i32, %c0_i32_0 : i32, i32, i32
  }
  func.func @transform_3(%arg0: i32, %arg1: i32) -> (i32, i32, i32) {
    %c0_i32 = arith.constant 0 : i32
    %c0_i32_0 = arith.constant 0 : i32
    %c0_i32_1 = arith.constant 0 : i32
    return %arg1, %c0_i32, %c0_i32_0 : i32, i32, i32
  }
  func.func @transform_4(%arg0: i32, %arg1: i32) -> (i32, i32, i32) {
    %c0_i32 = arith.constant 0 : i32
    %c0_i32_0 = arith.constant 0 : i32
    %c0_i32_1 = arith.constant 0 : i32
    return %arg1, %c0_i32, %c0_i32_0 : i32, i32, i32
  }
  func.func @transform_5(%arg0: i32, %arg1: i32) -> (i32, i32, i32) {
    %c0_i32 = arith.constant 0 : i32
    %c0_i32_0 = arith.constant 0 : i32
    %c0_i32_1 = arith.constant 0 : i32
    return %arg1, %c0_i32, %c0_i32_0 : i32, i32, i32
  }
  func.func @transform_6(%arg0: i32, %arg1: i32) -> (i32, i32, i32) {
    %c0_i32 = arith.constant 0 : i32
    %c0_i32_0 = arith.constant 0 : i32
    %c0_i32_1 = arith.constant 0 : i32
    return %arg1, %c0_i32, %c0_i32_0 : i32, i32, i32
  }
  func.func @transform_7(%arg0: i32, %arg1: i32) -> (i32, i32, i32) {
    %c0_i32 = arith.constant 0 : i32
    %c0_i32_0 = arith.constant 0 : i32
    %c0_i32_1 = arith.constant 0 : i32
    return %arg1, %c0_i32, %c0_i32_0 : i32, i32, i32
  }
  func.func @transform_8(%arg0: i32, %arg1: i32) -> (i32, i32, i32) {
    %c0_i32 = arith.constant 0 : i32
    %c0_i32_0 = arith.constant 0 : i32
    %c0_i32_1 = arith.constant 0 : i32
    return %arg1, %c0_i32, %c0_i32_0 : i32, i32, i32
  }
  func.func @transform_9(%arg0: i32, %arg1: i32) -> (i32, i32, i32) {
    %c0_i32 = arith.constant 0 : i32
    %c0_i32_0 = arith.constant 0 : i32
    %c0_i32_1 = arith.constant 0 : i32
    return %arg1, %c0_i32, %c0_i32_0 : i32, i32, i32
  }
  func.func @transform_10(%arg0: i32, %arg1: i32) -> (i32, i32, i32) {
    %c0_i32 = arith.constant 0 : i32
    %c0_i32_0 = arith.constant 0 : i32
    %c0_i32_1 = arith.constant 0 : i32
    return %arg1, %c0_i32, %c0_i32_0 : i32, i32, i32
  }
  func.func @transform_11(%arg0: i32, %arg1: i32) -> (i32, i32, i32) {
    %c0_i32 = arith.constant 0 : i32
    %c0_i32_0 = arith.constant 0 : i32
    %c0_i32_1 = arith.constant 0 : i32
    return %arg1, %c0_i32, %c0_i32_0 : i32, i32, i32
  }
  func.func @transform_12(%arg0: i32, %arg1: i32) -> (i32, i32, i32) {
    %c0_i32 = arith.constant 0 : i32
    %c0_i32_0 = arith.constant 0 : i32
    %c0_i32_1 = arith.constant 0 : i32
    return %arg1, %c0_i32, %c0_i32_0 : i32, i32, i32
  }
  func.func @transform_13(%arg0: i32, %arg1: i32) -> (i32, i32, i32) {
    %c0_i32 = arith.constant 0 : i32
    %c0_i32_0 = arith.constant 0 : i32
    %c0_i32_1 = arith.constant 0 : i32
    return %arg1, %c0_i32, %c0_i32_0 : i32, i32, i32
  }
  func.func @transform_14(%arg0: i32, %arg1: i32) -> (i32, i32, i32) {
    %c0_i32 = arith.constant 0 : i32
    %c0_i32_0 = arith.constant 0 : i32
    %c0_i32_1 = arith.constant 0 : i32
    return %arg1, %c0_i32, %c0_i32_0 : i32, i32, i32
  }
  func.func @transform_15(%arg0: i32, %arg1: i32) -> (i32, i32, i32) {
    %c0_i32 = arith.constant 0 : i32
    %c0_i32_0 = arith.constant 0 : i32
    %c0_i32_1 = arith.constant 0 : i32
    return %arg1, %c0_i32, %c0_i32_0 : i32, i32, i32
  }
  func.func @transform_16(%arg0: i32, %arg1: i32) -> (i32, i32, i32) {
    %c0_i32 = arith.constant 0 : i32
    %c0_i32_0 = arith.constant 0 : i32
    %c0_i32_1 = arith.constant 0 : i32
    return %arg1, %c0_i32, %c0_i32_0 : i32, i32, i32
  }
  func.func @transform_17(%arg0: i32, %arg1: i32) -> (i32, i32, i32) {
    %c0_i32 = arith.constant 0 : i32
    %c0_i32_0 = arith.constant 0 : i32
    %c0_i32_1 = arith.constant 0 : i32
    return %arg1, %c0_i32, %c0_i32_0 : i32, i32, i32
  }
  func.func @transform_18(%arg0: i32, %arg1: i32) -> (i32, i32) {
    %c0_i32 = arith.constant 0 : i32
    %c0_i32_0 = arith.constant 0 : i32
    return %arg0, %c0_i32 : i32, i32
  }
}

</mosaic_0001>

<bundles_post_ra>
// kernel: tpu_custom_call.1
= control target key start
LH: loop header
LB: loop body
LE: loop exit
PB: predicated region body
PF: predicated region fallthrough
CT: control target
= control target key end

     0   :  { %s4295_s0 = inlined_call_operand.hbm [shape: f32[16,128], index: 0, kind: input, shape index: {}]   ;;  %s4296_s1 = inlined_call_operand.hbm [shape: f32[2,1,8], index: 1, kind: input, shape index: {}]   ;;  %s4297_s2 = inlined_call_operand.hbm [shape: bf16[2,128,128], index: 2, kind: input, shape index: {}]   ;;  %s4298_s3 = inlined_call_operand.vmem [shape: f32[2,1,128], index: 3, kind: input, shape index: {}]   ;;  %s4299_s4 = inlined_call_operand.hbm [shape: bf16[2,128,128], index: 4, kind: input, shape index: {}]   ;;  %s4300_s5 = inlined_call_operand.hbm [shape: f32[2,1,128], index: 5, kind: input, shape index: {}]   ;;  %s4301_s6 = inlined_call_operand.hbm [shape: bf16[2,128,128], index: 6, kind: input, shape index: {}]   ;;  %s4302_s7 = inlined_call_operand.hbm [shape: f32[2,1,128], index: 7, kind: input, shape index: {}]   ;;  %s4303_s8 = inlined_call_operand.hbm [shape: bf16[2,128,128], index: 8, kind: input, shape index: {}]   ;;  %s4304_s9 = inlined_call_operand.vmem [shape: f32[2,1,128], index: 9, kind: input, shape index: {}]   ;;  %s4305_s10 = inlined_call_operand.hbm [shape: f32[2,1,128], index: 10, kind: input, shape index: {}]   ;;  %s4306_s11 = inlined_call_operand.vmem [shape: f32[2,1,128], index: 11, kind: input, shape index: {}]   ;;  %s4307_s12 = inlined_call_operand.hbm [shape: bf16[2,128,256], index: 12, kind: input, shape index: {}]   ;;  %s4308_s13 = inlined_call_operand.vmem [shape: f32[2,1,256], index: 13, kind: input, shape index: {}]   ;;  %s4309_s14 = inlined_call_operand.hbm [shape: bf16[2,256,128], index: 14, kind: input, shape index: {}]   ;;  %s4310_s15 = inlined_call_operand.vmem [shape: f32[2,1,128], index: 15, kind: input, shape index: {}]   ;;  %s4311_s16 = inlined_call_operand.vmem [shape: f32[2,1,128], index: 16, kind: input, shape index: {}]   ;;  %s4312_s17 = inlined_call_operand.vmem [shape: f32[2,1,128], index: 17, kind: input, shape index: {}]   ;;  %s4313_s18 = inlined_call_operand.hbm [shape: f32[16,128], index: 18, kind: output, shape index: {}]  }
   0x1   :  { %4323 = sst [smem:[#allocation25_spill]] %s4295_s0 }
   0x2   :  { %4324 = sst [smem:[#allocation26_spill]] %s4296_s1 }
   0x3   :  { %4325 = sst [smem:[#allocation27_spill]] %s4297_s2 }
   0x4   :  { %4326 = sst [smem:[#allocation28_spill]] %s4298_s3 }
   0x5   :  { %4327 = sst [smem:[#allocation29_spill]] %s4299_s4 }
   0x6   :  { %4328 = sst [smem:[#allocation30_spill]] %s4300_s5 }
   0x7   :  { %4329 = sst [smem:[#allocation31_spill]] %s4301_s6 }
   0x8   :  { %4330 = sst [smem:[#allocation32_spill]] %s4302_s7 }
   0x9   :  { %4331 = sst [smem:[#allocation33_spill]] %s4303_s8 }
   0xa   :  { %4332 = sst [smem:[#allocation34_spill]] %s4304_s9 }
   0xb   :  { %4333 = sst [smem:[#allocation35_spill]] %s4305_s10 }
   0xc   :  { %4334 = sst [smem:[#allocation36_spill]] %s4306_s11 }
   0xd   :  { %4335 = sst [smem:[#allocation37_spill]] %s4307_s12 }
   0xe   :  { %4336 = sst [smem:[#allocation38_spill]] %s4308_s13 }
   0xf   :  { %4337 = sst [smem:[#allocation39_spill]] %s4310_s15 }
  0x10   :  { %4338 = sst [smem:[#allocation40_spill]] %s4311_s16 }
  0x11   :  { %4339 = sst [smem:[#allocation41_spill]] %s4312_s17 }
  0x12   :  { %4340 = sst [smem:[#allocation42_spill]] %s4313_s18 }
  0x13   :  { %23 = vsyncpa [#allocation3], 0 }
  0x14   :  { %24 = vsyncpa [#allocation6], 0 }
  0x15   :  { %25 = vsyncpa [#allocation4], 0  ;;  %s3751_s27 = smov 0   ;;  %s3753_s28 = smov 0  }
  0x16   :  { %s3755_s29 = smov 0   ;;  %s3757_s30 = smov 0  }
  0x17   :  { %s3759_s0 = smov 0   ;;  %s3761_s19 = smov 0  }
  0x18 LB: > { %4341 = sst [smem:[#allocation21_spill]] %s3627_s29  ;;  %s3780_s1 = sadd.s32 4294967295, %s3639_s19   ;;  %s3639_s19 = sphi %s3761_s19, %s31_s19   ;;  %s3635_s0 = sphi %s3759_s0, %s4387_s0   ;;  %s3631_s30 = sphi %s3757_s30, %s4386_s30   ;;  %s3627_s29 = sphi %s3755_s29, %s4382_s29   ;;  %s3623_s28 = sphi %s3753_s28, %s4385_s28   ;;  %s3619_s27 = sphi %s3751_s27, %s4384_s27  }
  0x19   : > { %4342 = sst [smem:[#allocation22_spill]] %s3639_s19  ;;  %s40_s20 = sadd.s32 1, %s3635_s0 }
  0x1a   : > { %p41_p0 = scmp.ge.s32.totalorder %s40_s20, 2  ;;  %s102_s21 = sadd.s32 1, %s3627_s29 }
  0x1b   : > { %p109_p1 = scmp.ne.s32.totalorder %s3627_s29, %s3623_s28  ;;  %p110_p2 = scmp.eq.s32.totalorder %s3639_s19, 0 }
  0x1c   : > { %s4389_s20 = smov (%p41_p0, %s40_s20), 0  ;;  %p115_p4 = scmp.ne.s32.totalorder %s3623_s28, %s3619_s27 }
  0x1d   : > { %4343 = sst [smem:[#allocation23_spill]] %s4389_s20  ;;  %p3789_p3 = por %p110_p2, %p109_p1 }
  0x1e   : > { %s99_s2 = ssub.s32 %s3635_s0, %s4389_s20  ;;  %p116_p5 = scmp.eq.s32.totalorder %s3780_s1, 0 }
  0x1f   : > { %p100_p6 = scmp.eq.s32.totalorder %s99_s2, 0  ;;  %p2650_p7 = scmp.ge.s32.totalorder %s3639_s19, 1 }
  0x20   : > { %p3800_p8 = por %p116_p5, %p115_p4  ;;  %p542_p9 = scmp.lt.s32.totalorder %s3639_s19, 3 }
  0x21   : > { %s3806_s24 = scalar_select %p100_p6, %s3627_s29, %s102_s21  }
  0x22   : > { %p3808_p10 = pnand %p2650_p7, %p542_p9  ;;  %s4348_s20 = sld [smem:[#allocation25_spill]] }
  0x23   : > { %4346 = sst [smem:[#allocation24_spill]] %s3806_s24  ;;  %s3641_s18 = smov [#allocation2]  }
  0x24   : > { %p3063_p11 = pneg %p3808_p10  ;;  %s558_s17 = sshll.u32 %s3641_s18, 4  ;;  %s559_s17 = int_to_ptr.vmem [resolvable:$true] %s558_s17 }
  0x25   : > { %p3100_p13 = scmp.lt.s32.totalorder %s3639_s19, 2  ;;  %s4315_s24 = smov 128  }
  0x26   : > { %p3819_p12 = pnand %p3063_p11, %p116_p5  ;;  %s4316_s16 = smov 8  }
  0x27   : > { %p3831_p0 = pnand %p3100_p13, %p3789_p3  ;;  %s588_s18 = sand.u32 1, %s3639_s19  }
  0x28   : > { %s556_s2 = sshll.u32 %s4348_s20, 4  ;;  %s3837_s26 = sand.u32 1, %s3627_s29   ;;  %s557_s2 = int_to_ptr.hbm [resolvable:$true] %s556_s2 }
  0x29   : > { %3066 = dma.hbm_to_vmem [thread:$0]  (!%p3819_p12), %s557_s2, 256, %s559_s17, [#allocation3], %s4315_s24, %s4315_s24, %s4316_s16  }
  0x2a   : > { %s3840_s27 = sshll.u32 %s3837_s26, 6  ;;  %s3843_s15 = sshll.u32 %s3635_s0, 6 }
  0x2b   : > { %s4351_s17 = sld [smem:[#allocation27_spill]]  ;;  %s592_s2 = scalar_lea.vmem [#allocation7], %s3840_s27 }
  0x2c   : > { %s600_s24 = sshll.u32 %s592_s2, 4  ;;  %s3850_s29 = scalar_lea.sflag [#allocation3], %s588_s18  ;;  %s601_s24 = int_to_ptr.vmem [resolvable:$true] %s600_s24 }
  0x2d   : > { %s4319_s19 = smov 64   ;;  %s4321_s9 = smov 4  }
  0x2e   : > { %s4352_s4 = sld [smem:[#allocation29_spill]]  ;;  %s641_s11 = scalar_lea.vmem [#allocation9], %s3837_s26 }
  0x2f   : > { %s4353_s5 = sld [smem:[#allocation30_spill]]  ;;  %s648_s13 = sshll.u32 %s641_s11, 4  ;;  %s649_s13 = int_to_ptr.vmem [resolvable:$true] %s648_s13 }
  0x30   : > { %s4354_s6 = sld [smem:[#allocation31_spill]] }
  0x31   : > { %s597_s22 = scalar_lea.hbm %s4351_s17, %s3843_s15  ;;  %s4356_s7 = sld [smem:[#allocation32_spill]] }
  0x32   : > { %s598_s16 = sshll.u32 %s597_s22, 4  ;;  %s620_s22 = scalar_lea.vmem [#allocation8], %s3840_s27  ;;  %s599_s16 = int_to_ptr.hbm [resolvable:$true] %s598_s16 }
  0x33   : > { %3073 = dma.hbm_to_vmem [thread:$0]  (!%p3831_p0), %s599_s16, 1024, %s601_s24, %s3850_s29, %s4319_s19, %s4319_s19, %s4321_s9  }
  0x34   : > { %s625_s17 = scalar_lea.hbm %s4352_s4, %s3843_s15  ;;  %s628_s18 = sshll.u32 %s620_s22, 4  ;;  %s629_s18 = int_to_ptr.vmem [resolvable:$true] %s628_s18 }
  0x35   : > { %s626_s2 = sshll.u32 %s625_s17, 4  ;;  %s644_s24 = scalar_lea.hbm %s4353_s5, %s3635_s0  ;;  %s627_s2 = int_to_ptr.hbm [resolvable:$true] %s626_s2 }
  0x36   : > { %3076 = dma.hbm_to_vmem [thread:$0]  (!%p3831_p0), %s627_s2, 1024, %s629_s18, %s3850_s29, %s4319_s19, %s4319_s19, %s4321_s9  }
  0x37   : > { %s646_s4 = sshll.u32 %s644_s24, 4  ;;  %s664_s18 = scalar_lea.hbm %s4354_s6, %s3843_s15  ;;  %s647_s4 = int_to_ptr.hbm [resolvable:$true] %s646_s4 }
  0x38   : > { %3079 = dma.hbm_to_vmem [thread:$0]  (!%p3831_p0), %s647_s4, 16, %s649_s13, %s3850_s29  }
  0x39   : > { %s659_s2 = scalar_lea.vmem [#allocation10], %s3840_s27  ;;  %s665_s3 = sshll.u32 %s664_s18, 4  ;;  %s666_s3 = int_to_ptr.hbm [resolvable:$true] %s665_s3 }
  0x3a   : > { %s667_s19 = sshll.u32 %s659_s2, 4  ;;  %s4355_s16 = smov 64   ;;  %s668_s19 = int_to_ptr.vmem [resolvable:$true] %s667_s19 }
  0x3b   : > { %3082 = dma.hbm_to_vmem [thread:$0]  (!%p3831_p0), %s666_s3, 1024, %s668_s19, %s3850_s29, %s4355_s16, %s4355_s16, %s4321_s9  }
  0x3c   : > { %s683_s11 = scalar_lea.hbm %s4356_s7, %s3635_s0  ;;  %s680_s13 = scalar_lea.vmem [#allocation11], %s3837_s26 }
  0x3d   : > { %s687_s17 = sshll.u32 %s680_s13, 4  ;;  %s685_s22 = sshll.u32 %s683_s11, 4  ;;  %s688_s17 = int_to_ptr.vmem [resolvable:$true] %s687_s17  ;;  %s686_s22 = int_to_ptr.hbm [resolvable:$true] %s685_s22 }
  0x3e   : > { %3085 = dma.hbm_to_vmem [thread:$0]  (!%p3831_p0), %s686_s22, 16, %s688_s17, %s3850_s29  }
  0x3f   : > { %s4357_s8 = sld [smem:[#allocation33_spill]]  ;;  %s698_s3 = scalar_lea.vmem [#allocation12], %s3840_s27 }
  0x40   : > { %s706_s9 = sshll.u32 %s698_s3, 4  ;;  %s4358_s4 = smov 4   ;;  %s707_s9 = int_to_ptr.vmem [resolvable:$true] %s706_s9 }
  0x41   : > { %s4359_s10 = sld [smem:[#allocation35_spill]]  ;;  %s725_s17 = scalar_lea.vmem [#allocation13], %s3837_s26 }
  0x42   : > { %s732_s22 = sshll.u32 %s725_s17, 4  ;;  %s2967_s27 = sshll.u32 %s3635_s0, 7  ;;  %s733_s22 = int_to_ptr.vmem [resolvable:$true] %s732_s22 }
  0x43   : > { %s4360_s12 = sld [smem:[#allocation37_spill]]  ;;  %s783_s6 = scalar_lea.hbm %s4309_s14, %s2967_s27 }
  0x44   : > { %s4361_s17 = sld [smem:[#allocation26_spill]]  ;;  %s784_s13 = sshll.u32 %s783_s6, 4  ;;  %s785_s13 = int_to_ptr.hbm [resolvable:$true] %s784_s13 }
  0x45   : > { %s703_s19 = scalar_lea.hbm %s4357_s8, %s3843_s15  ;;  %s2666_s15 = sshll.u32 %s3837_s26, 7 }
  0x46   : > { %s704_s24 = sshll.u32 %s703_s19, 4  ;;  %s749_s3 = scalar_lea.vmem [#allocation14], %s2666_s15  ;;  %s705_s24 = int_to_ptr.hbm [resolvable:$true] %s704_s24 }
  0x47   : > { %3088 = dma.hbm_to_vmem [thread:$0]  (!%p3831_p0), %s705_s24, 1024, %s707_s9, %s3850_s29, %s4355_s16, %s4355_s16, %s4358_s4  }
  0x48   : > { %s728_s5 = scalar_lea.hbm %s4359_s10, %s3635_s0  ;;  %s757_s24 = sshll.u32 %s749_s3, 4  ;;  %s758_s24 = int_to_ptr.vmem [resolvable:$true] %s757_s24 }
  0x49   : > { %s730_s18 = sshll.u32 %s728_s5, 4  ;;  %s754_s9 = scalar_lea.hbm %s4360_s12, %s2967_s27  ;;  %s731_s18 = int_to_ptr.hbm [resolvable:$true] %s730_s18 }
  0x4a   : > { %3091 = dma.hbm_to_vmem [thread:$0]  (!%p3831_p0), %s731_s18, 16, %s733_s22, %s3850_s29  }
  0x4b   : > { %s755_s11 = sshll.u32 %s754_s9, 4  ;;  %s572_s5 = sshll.u32 %s4361_s17, 4  ;;  %s756_s11 = int_to_ptr.hbm [resolvable:$true] %s755_s11  ;;  %s573_s5 = int_to_ptr.hbm [resolvable:$true] %s572_s5 }
  0x4c   : > { %s4362_s26 = smov 8   ;;  %s4363_s22 = smov 128  }
  0x4d   : > { %3094 = dma.hbm_to_vmem [thread:$0]  (!%p3831_p0), %s756_s11, 2048, %s758_s24, %s3850_s29, %s4363_s22, %s4363_s22, %s4362_s26  }
  0x4e   : > { %s3646_s18 = smov [#allocation5]   ;;  %s3647_s19 = smov 16  }
  0x4f   : > { %s574_s2 = sshll.u32 %s3646_s18, 4  ;;  %s3648_s3 = smov 1   ;;  %s575_s2 = int_to_ptr.vmem [resolvable:$true] %s574_s2 }
  0x50   : > { %3069 = dma.hbm_to_vmem [thread:$0]  (!%p3819_p12), %s573_s5, 32, %s575_s2, [#allocation6], %s3647_s19, %s3647_s19, %s3648_s3  }
  0x51   : > { %s778_s8 = scalar_lea.vmem [#allocation15], %s2666_s15  ;;  %816 = sbr.rel (%p3808_p10) target bundleno = 2696 (0xa88), region = 92 }
  0x52   : > { %s786_s17 = sshll.u32 %s778_s8, 4  ;;  %s787_s17 = int_to_ptr.vmem [resolvable:$true] %s786_s17 }
  0x53   : > { %3097 = dma.hbm_to_vmem [thread:$0]  (!%p3831_p0), %s785_s13, 2048, %s787_s17, %s3850_s29, %s4355_s16, %s4355_s16, %s4358_s4  }
  0x56   : > { %3602 = dma.done.wait (%p116_p5), [#allocation3], 256  }
  0x57   : > { %3604 = vsyncadd (%p116_p5), [#allocation3], 4294967040 }
  0x58   : > { %3606 = dma.done.wait (%p116_p5), [#allocation6], 32  }
  0x59   : > { %3608 = vsyncadd (%p116_p5), [#allocation6], 4294967264  ;;  %s828_s7 = sand.u32 1, %s3780_s1   ;;  %s3952_s8 = sand.u32 1, %s3623_s28  }
  0x5a   : > { %s2675_s29 = sshll.u32 %s3952_s8, 6  ;;  %s829_s25 = scalar_lea.sflag [#allocation3], %s828_s7 }
  0x5b   : > { %s3955_s21 = scalar_lea.vmem [#allocation7], %s2675_s29 }
  0x5c   : > { %3610 = dma.done.wait (%p3800_p8), %s829_s25, 8240  }
  0x5d   : > { %3612 = vsyncadd (%p3800_p8), %s829_s25, 4294959056  ;;  %s2679_s20 = sshll.u32 %s3952_s8, 7  ;;  %p1019_p1 = scmp.lt.s32.totalorder %s3631_s30, 1 }
  0x5e   : > { %s4366_s2 = sld [smem:[#allocation36_spill]]  ;;  %s3996_s22 = scalar_lea.vmem [#allocation8], %s2675_s29 }
  0x5f   : > { %s3964_s16 = scalar_select %p1019_p1, %s3631_s30, 1 }
  0x60   : > { %s4367_s13 = sld [smem:[#allocation38_spill]]  ;;  %s851_s18 = scalar_lea.vmem [#allocation9], %s3952_s8 }
  0x61   : > { %s2681_s3 = sshll.u32 %s3964_s16, 1  ;;  %s4368_s4 = sld [smem:[#allocation39_spill]] }
  0x62   : > { %s4369_s23 = sld [smem:[#allocation40_spill]]  ;;  %s870_s9 = scalar_lea.vmem [#allocation11], %s3952_s8 }
  0x63   : > { %s4370_s5 = sld [smem:[#allocation41_spill]]  ;;  %s889_s6 = scalar_lea.vmem [#allocation13], %s3952_s8 }
  0x64   : > { %s1027_s19 = scalar_lea.vmem %s4366_s2, %s3964_s16  ;;  %s3999_s2 = scalar_lea.vmem [#allocation10], %s2675_s29 }
  0x65   : > { %s4007_s7 = scalar_lea.vmem [#allocation15], %s2679_s20  ;;  %p2682_p2 = scmp.ne.s32.totalorder %s3631_s30, 0 }
  0x66   : > { %s3982_s17 = scalar_lea.vmem %s4367_s13, %s2681_s3  ;;  %s4002_s3 = scalar_lea.vmem [#allocation12], %s2675_s29 }
  0x67   : > { %s1034_s15 = scalar_lea.vmem %s4368_s4, %s3964_s16  ;;  %s4005_s13 = scalar_lea.vmem [#allocation14], %s2679_s20 }
  0x68   : > { %s1037_s12 = scalar_lea.vmem %s4369_s23, %s3964_s16  ;;  %1046 = sbr.rel (%p2682_p2) target bundleno = 112 (0x70), region = 140 }
  0x69   : > { %s1040_s26 = scalar_lea.vmem %s4370_s5, %s3964_s16 }
  0x6d   : > { %v1047_v0 = vld [vmem:[#allocation2] sm:$0xff]  ;;  %v1048_v1 = vld [vmem:[#allocation2 + $0x8] sm:$0xff] }
  0x6e   : > { %1049 = vst [vmem:[#allocation16] sm:$0xff] %v1047_v0 }
  0x6f   : > { %1050 = vst [vmem:[#allocation16 + $0x8] sm:$0xff] %v1048_v1 }
  0x70 PF: > { %v2976_v2 = vld [vmem:[%s3955_s21 + $0x38] sm:$0xff]  ;;  %v2975_v4 = vld [vmem:[%s3955_s21 + $0x30] sm:$0xff]  ;;  %v2974_v6 = vld [vmem:[%s3955_s21 + $0x28] sm:$0xff]  ;;  %s4371_s29 = sld [smem:[#allocation28_spill]]  ;;  %vm1336_vm0 = vcmask 261120   ;;  %vm1375_vm1 = vcmask 64512  }
  0x71   : > { %v2984_v3 = vld [vmem:[%s3996_s22 + $0x38] sm:$0xff]  ;;  %1176 = vmatpush.bf16.msra.mxu0 %v2976_v2  ;;  %v2983_v5 = vld [vmem:[%s3996_s22 + $0x30] sm:$0xff]  ;;  %v2982_v7 = vld [vmem:[%s3996_s22 + $0x28] sm:$0xff]  ;;  %vm1403_vm2 = vcmask 1043456   ;;  %s3650_s23 = smov 64   ;;  %s3651_s25 = smov 32  }
  0x72   : > { %1242 = vmatpush.bf16.msra.mxu1 %v2984_v3  ;;  %v2973_v8 = vld [vmem:[%s3955_s21 + $0x20] sm:$0xff]  ;;  %v2972_v10 = vld [vmem:[%s3955_s21 + $0x18] sm:$0xff]  ;;  %v2971_v12 = vld [vmem:[%s3955_s21 + $0x10] sm:$0xff]  ;;  %s4373_s24 = sld [smem:[#allocation34_spill]]  ;;  %p3103_p3 = scmp.eq.s32.totalorder %s3780_s1, 1 }
  0x73   : > { %v2981_v9 = vld [vmem:[%s3996_s22 + $0x20] sm:$0xff]  ;;  %v2980_v11 = vld [vmem:[%s3996_s22 + $0x18] sm:$0xff]  ;;  %v2979_v13 = vld [vmem:[%s3996_s22 + $0x10] sm:$0xff] }
  0x74   : > { %v2970_v14 = vld [vmem:[%s3955_s21 + $0x8] sm:$0xff]  ;;  %v2969_v16 = vld [vmem:[%s3955_s21] sm:$0xff]  ;;  %v2991_v24 = vld [vmem:[%s3999_s2 + $0x30] sm:$0xff]  ;;  %s3649_s21 = smov 96  }
  0x75   : > { %1177 = vmatpush.bf16.msra.mxu0 %v2975_v4  ;;  %v2978_v15 = vld [vmem:[%s3996_s22 + $0x8] sm:$0xff]  ;;  %v2977_v17 = vld [vmem:[%s3996_s22] sm:$0xff]  ;;  %v2987_v50 = vld [vmem:[%s3999_s2 + $0x10] sm:$0xff] }
  0x76   : > { %1243 = vmatpush.bf16.msra.mxu1 %v2983_v5  ;;  %v4026_v18 = vld [vmem:[#allocation16] sm:$0xff]  ;;  %v4028_v19 = vld [vmem:[#allocation16 + $0x8] sm:$0xff]  ;;  %s4372_s20 = scalar_lea.vmem %s4371_s29, %s3964_s16  ;;  %v2992_v23 = vld [vmem:[%s3999_s2 + $0x38] sm:$0xff]  ;;  %s4379_s29 = sld [smem:[#allocation42_spill]] }
  0x77   : > { %v1059_v20 = vpack.c.bf16 %v4028_v19, %v4026_v18  ;;  %v3168_v21 = vld [vmem:[%s4372_s20] ss:$0 sm:$0xff]  ;;  %1308 = vmatpush.bf16.msra.mxu2 %v2992_v23  ;;  %v2989_v36 = vld [vmem:[%s3999_s2 + $0x20] sm:$0xff]  ;;  %v2988_v44 = vld [vmem:[%s3999_s2 + $0x18] sm:$0xff] }
  0x78   : > { %v3169_v22 = vld [vmem:[%s851_s18] ss:$0 sm:$0xff]  ;;  %v2985_v54 = vld [vmem:[%s3999_s2] sm:$0xff]  ;;  %v1053_v57 = vld [vmem:[#allocation5] sm:$0x1]  ;;  %s4374_s11 = scalar_lea.vmem %s4373_s24, %s3964_s16  ;;  %s3654_s16 = smov 128  }
  0x79   : > { %1178 = vmatpush.bf16.msra.mxu0 %v2974_v6  ;;  %v2990_v31 = vld [vmem:[%s3999_s2 + $0x28] sm:$0xff]  ;;  %v1055_v61 = vsub.f32 1.0, %v1053_v57 }
  0x7a   : > { %1244 = vmatpush.bf16.msra.mxu1 %v2982_v7  ;;  %v2986_v52 = vld [vmem:[%s3999_s2 + $0x8] sm:$0xff] }
  0x7b   : > { %1309 = vmatpush.bf16.msra.mxu2 %v2991_v24  ;;  %v1057_v62 = vmul.f32 -1e+09, %v1055_v61  ;;  %v3170_v5 = vld [vmem:[%s870_s9] ss:$0 sm:$0xff] }
  0x7c   : > { %s2347_s20 = sshll.u32 %s4379_s29, 4  ;;  %s2348_s20 = int_to_ptr.hbm [resolvable:$true] %s2347_s20 }
  0x7d   : > { %1179 = vmatpush.bf16.msra.mxu0 %v2973_v8  ;;  %v4071_v0 = vperm.slane %v1057_v62, 0 }
  0x7e   : > { %1245 = vmatpush.bf16.msra.mxu1 %v2981_v9 }
  0x7f   : > { %1310 = vmatpush.bf16.msra.mxu2 %v2990_v31 }
  0x81   : > { %1180 = vmatpush.bf16.msra.mxu0 %v2972_v10 }
  0x82   : > { %1246 = vmatpush.bf16.msra.mxu1 %v2980_v11 }
  0x83   : > { %1311 = vmatpush.bf16.msra.mxu2 %v2989_v36 }
  0x85   : > { %1181 = vmatpush.bf16.msra.mxu0 %v2971_v12 }
  0x86   : > { %1247 = vmatpush.bf16.msra.mxu1 %v2979_v13 }
  0x87   : > { %1312 = vmatpush.bf16.msra.mxu2 %v2988_v44 }
  0x89   : > { %1182 = vmatpush.bf16.msra.mxu0 %v2970_v14 }
  0x8a   : > { %1248 = vmatpush.bf16.msra.mxu1 %v2978_v15 }
  0x8b   : > { %1313 = vmatpush.bf16.msra.mxu2 %v2987_v50 }
  0x8d   : > { %1183 = vmatpush.bf16.msra.mxu0 %v2969_v16 }
  0x8e   : > { %1249 = vmatpush.bf16.msra.mxu1 %v2977_v17 }
  0x8f   : > { %1314 = vmatpush.bf16.msra.mxu2 %v2986_v52 }
  0x90   : > { %1184 = vmatmul.bf16.vlgmr.msra.gmra.mxu0 %v1059_v20 }
  0x91   : > { %1250 = vmatmul.bf16.vlgmr.msra.gmra.mxu1 %v1059_v20 }
  0x93   : > { %1315 = vmatpush.bf16.msra.mxu2 %v2985_v54 }
  0x96   : > { %1316 = vmatmul.bf16.vlgmr.msra.gmra.mxu2 %v1059_v20 }
 0x10d   : > { %v1185_v25 = vpop.f32.mrf.mxu0 }
 0x10e   : > { %v1251_v26 = vpop.f32.mrf.mxu1  ;;  %v1186_v27 = vadd.f32 %v3168_v21, %v1185_v25 }
 0x10f   : > { %v1252_v28 = vadd.f32 %v3169_v22, %v1251_v26 }
 0x110   : > { %v1322_v29 = vmul.f32 0.17677669, %v1186_v27 }
 0x111   : > { %v1326_v30 = vpack.c.bf16 %v1252_v28, %v1252_v28 }
 0x112   : > { %v1324_v32 = vpack.c.bf16 %v1322_v29, %v1322_v29 }
 0x113   : > { %v1446_v33 = vunpack.c.l.b16 %v1326_v30  ;;  %v1341_v34 = vsel %vm1336_vm0, %v1326_v30, 0 }
 0x114   : > { %1350 = vmatpush.bf16.xpose.msra.mxu3 %v1341_v34  ;;  %v1441_v39 = vunpack.c.l.b16 %v1324_v32 }
 0x115   : > { %v4043_v35 = vpack.c.b16 %v1446_v33, %v1446_v33  ;;  %v1187_v37 = vpop.f32.mrf.mxu0 }
 0x116   : > { %v1253_v38 = vpop.f32.mrf.mxu1  ;;  %v1188_v40 = vadd.f32 %v3168_v21, %v1187_v37  ;;  %v4051_v47 = vpack.c.b16 %v1441_v39, %v1441_v39  ;;  %v1054_v21 = vld [vmem:[#allocation5 + $0x1] sm:$0x1] }
 0x117   : > { %v1254_v41 = vadd.f32 %v3169_v22, %v1253_v38  ;;  %1448 = vrot.lane.b32.xlu0 %v4043_v35, %s3649_s21  ;;  %v1056_v23 = vsub.f32 1.0, %v1054_v21 }
 0x118   : > { %v1323_v42 = vmul.f32 0.17677669, %v1188_v40 }
 0x119   : > { %v1327_v43 = vpack.c.bf16 %v1254_v41, %v1254_v41  ;;  %v1317_v7 = vpop.f32.mrf.mxu2  ;;  %v1058_v25 = vmul.f32 -1e+09, %v1056_v23 }
 0x11a   : > { %v1325_v48 = vpack.c.bf16 %v1323_v42, %v1323_v42  ;;  %v1318_v8 = vadd.f32 %v3170_v5, %v1317_v7 }
 0x11b   : > { %v1475_v45 = vunpack.c.l.b16 %v1327_v43  ;;  %2779 = vmatmul.msk.bf16.vlgmr.msra.gmra.mxu3 %vm1336_vm0, %v1324_v32  ;;  %v1360_v46 = vsel %vm1336_vm0, %v1327_v43, 0  ;;  %v4081_v28 = vperm.slane %v1058_v25, 0 }
 0x11c   : > { %1369 = vmatpush.bf16.xpose.msrb.mxu3 %v1360_v46  ;;  %v1470_v51 = vunpack.c.l.b16 %v1325_v48  ;;  %v1328_v9 = vpack.c.bf16 %v1318_v8, %v1318_v8 }
 0x11d   : > { %v4053_v49 = vpack.c.b16 %v1475_v45, %v1475_v45 }
 0x11e   : > { %v4061_v53 = vpack.c.b16 %v1470_v51, %v1470_v51  ;;  %v1405_v10 = vsel %vm1403_vm2, %v1328_v9, 0  ;;  %v1523_v29 = vunpack.c.l.b16 %v1328_v9 }
 0x11f   : > { %1477 = vrot.lane.b32.xlu1 %v4053_v49, %s3649_s21  ;;  %1443 = vrot.lane.b32.xlu0 %v4051_v47, %s3649_s21 }
 0x120   : > { %v4084_v32 = vpack.c.b16 %v1523_v29, %v1523_v29 }
 0x121   : > { %v1319_v15 = vpop.f32.mrf.mxu2 }
 0x122   : > { %v1320_v37 = vadd.f32 %v3170_v5, %v1319_v15 }
 0x124   : > { %1414 = vmatpush.bf16.msra.mxu3 %v1405_v10  ;;  %v1329_v38 = vpack.c.bf16 %v1320_v37, %v1320_v37 }
 0x126   : > { %v1424_v42 = vsel %vm1403_vm2, %v1329_v38, 0 }
 0x127   : > { %1472 = vrot.lane.b32.xlu1 %v4061_v53, %s3649_s21  ;;  %1433 = vmatpush.bf16.msrb.mxu0 %v1424_v42 }
 0x12b   : > { %2780 = vmatmul.msk.bf16.vlgmr.msrb.gmra.mxu3 %vm1336_vm0, %v1325_v48 }
 0x189   : > { %v1449_v55 = vpop.permute.xlu0 %1448 }
 0x18a   : > { %v1454_v56 = vsel %vm1336_vm0, %v1449_v55, 0 }
 0x18b   : > { %1463 = vmatpush.bf16.xpose.msrb.mxu1 %v1454_v56 }
 0x191   : > { %v1478_v58 = vpop.permute.xlu1 %1477  ;;  %v1444_v59 = vpop.permute.xlu0 %1443 }
 0x192   : > { %2783 = vmatmul.msk.bf16.vlgmr.msrb.gmra.mxu1 %vm1336_vm0, %v1444_v59  ;;  %v1483_v60 = vsel %vm1336_vm0, %v1478_v58, 0 }
 0x193   : > { %1492 = vmatpush.bf16.xpose.msrb.mxu2 %v1483_v60 }
 0x199   : > { %v1473_v63 = vpop.permute.xlu1 %1472 }
 0x19a   : > { %2784 = vmatmul.msk.bf16.vlgmr.msrb.gmra.mxu2 %vm1336_vm0, %v1473_v63 }
 0x19e   : > { %v1352_v1 = vpop.f32.mrf.mxu3 }
 0x19f   : > { %v1353_v2 = vadd.f32 %v1352_v1, %v4071_v0 }
 0x1a1   : > { %v1376_v3 = vsel %vm1375_vm1, %v1353_v2, -inf }
 0x1a2   : > { %1377 = vmax.xlane.f32.xlu2 %v1376_v3 }
 0x1a6   : > { %v1354_v4 = vpop.f32.mrf.mxu3 }
 0x1a7   : > { %v1547_v4 = vunpack.c.l.b16 %v1329_v38  ;;  %v2993_v38 = vld [vmem:[%s4002_s3] sm:$0xff] }
 0x1a9   : > { %v4104_v5 = vpack.c.b16 %v1547_v4, %v1547_v4 }
 0x1ae   : > { %v1371_v6 = vpop.f32.mrf.mxu3 }
 0x1af   : > { %v1372_v34 = vadd.f32 %v1371_v6, %v4081_v28 }
 0x1b1   : > { %v1379_v36 = vsel %vm1375_vm1, %v1372_v34, -inf }
 0x1b6   : > { %v1373_v11 = vpop.f32.mrf.mxu3 }
 0x20f   : > { %v1465_v12 = vpop.f32.mrf.mxu1 }
 0x210   : > { %v1466_v13 = vadd.f32 %v1465_v12, %v4071_v0 }
 0x212   : > { %v1498_v14 = vsel %vm1375_vm1, %v1466_v13, -inf }
 0x213   : > { %1499 = vmax.xlane.f32.xlu2 %v1498_v14 }
 0x215   : > { %v1378_v16 = vpop.xlane.xlu2 %1377 }
 0x216   : > { %v1382_v17 = vsub.f32 %v1353_v2, %v1378_v16  ;;  %v2995_v16 = vld [vmem:[%s4002_s3 + $0x10] sm:$0xff] }
 0x217   : > { %v1467_v20 = vpop.f32.mrf.mxu1 }
 0x218   : > { %v1384_v22 = vmul.f32 1.442695, %v1382_v17 }
 0x21a   : > { %3177 = vpow2.f32 %v1384_v22 }
 0x21d   : > { %v1494_v24 = vpop.f32.mrf.mxu2 }
 0x21e   : > { %v1495_v30 = vadd.f32 %v1494_v24, %v4081_v28 }
 0x220   : > { %v3178_v26 = vpop.eup %3177  ;;  %v1501_v33 = vsel %vm1375_vm1, %v1495_v30, -inf }
 0x221   : > { %v1388_v27 = vsel %vm1375_vm1, %v3178_v26, 0.0 }
 0x222   : > { %1389 = vadd.xlane.f32.xlu0 %v1388_v27 }
 0x225   : > { %v1496_v31 = vpop.f32.mrf.mxu2 }
 0x226   : > { %v2994_v31 = vld [vmem:[%s4002_s3 + $0x8] sm:$0xff] }
 0x227   : > { %1621 = vmatpush.bf16.msra.mxu2 %v2994_v31 }
 0x22a   : > { %1502 = vmax.xlane.f32.xlu0 %v1501_v33 }
 0x22b   : > { %1525 = vrot.lane.b32.xlu2 %v4084_v32, %s3649_s21  ;;  %1622 = vmatpush.bf16.msra.mxu2 %v2993_v38 }
 0x233   : > { %1631 = vrot.lane.b32.xlu2 %v4043_v35, %s3650_s23 }
 0x23b   : > { %1629 = vrot.lane.b32.xlu2 %v4051_v47, %s3650_s23 }
 0x264   : > { %1380 = vmax.xlane.f32.xlu2 %v1379_v36 }
 0x286   : > { %v1500_v39 = vpop.xlane.xlu2 %1499 }
 0x287   : > { %v1504_v40 = vsub.f32 %v1466_v13, %v1500_v39  ;;  %v2996_v13 = vld [vmem:[%s4002_s3 + $0x18] sm:$0xff] }
 0x288   : > { %1592 = vmatpush.bf16.msra.mxu1 %v2996_v13 }
 0x289   : > { %v1506_v41 = vmul.f32 1.442695, %v1504_v40 }
 0x28b   : > { %3179 = vpow2.f32 %v1506_v41 }
 0x28c   : > { %1593 = vmatpush.bf16.msra.mxu1 %v2995_v16 }
 0x28e   : > { %v1526_v43 = vpop.permute.xlu2 %1525 }
 0x28f   : > { %v1531_v44 = vsel %vm1403_vm2, %v1526_v43, 0 }
 0x290   : > { %1540 = vmatpush.bf16.msrb.mxu3 %v1531_v44 }
 0x291   : > { %v3180_v45 = vpop.eup %3179 }
 0x292   : > { %v1510_v46 = vsel %vm1375_vm1, %v3180_v45, 0.0 }
 0x293   : > { %1511 = vadd.xlane.f32.xlu1 %v1510_v46 }
 0x295   : > { %v1390_v48 = vpop.xlane.xlu0 %1389 }
 0x296   : > { %3181 = vrcp.f32 %v1390_v48  ;;  %v1632_v54 = vpop.permute.xlu2 %1631 }
 0x297   : > { %v1637_v58 = vsel %vm1336_vm0, %v1632_v54, 0 }
 0x29c   : > { %v3182_v50 = vpop.eup %3181 }
 0x29d   : > { %v1396_v51 = vmul.f32 %v3182_v50, %v3178_v26  ;;  %v1503_v52 = vpop.xlane.xlu0 %1502 }
 0x29e   : > { %v1505_v55 = vsub.f32 %v1495_v30, %v1503_v52  ;;  %v1630_v61 = vpop.permute.xlu2 %1629 }
 0x29f   : > { %v1398_v56 = vpack.c.bf16 %v1396_v51, %v1396_v51 }
 0x2a0   : > { %v1508_v57 = vmul.f32 1.442695, %v1505_v55 }
 0x2a1   : > { %2781 = vmatmul.msk.bf16.vlgmr.msra.gmra.mxu3 %vm1375_vm1, %v1398_v56 }
 0x2a2   : > { %3183 = vpow2.f32 %v1508_v57  ;;  %1646 = vmatpush.bf16.xpose.msra.mxu3 %v1637_v58 }
 0x2a8   : > { %v3184_v59 = vpop.eup %3183 }
 0x2a9   : > { %v1513_v60 = vsel %vm1375_vm1, %v3184_v59, 0.0 }
 0x2aa   : > { %1514 = vadd.xlane.f32.xlu0 %v1513_v60 }
 0x2be   : > { %1654 = vrot.lane.b32.xlu0 %v4053_v49, %s3650_s23 }
 0x2d7   : > { %v1381_v62 = vpop.xlane.xlu2 %1380 }
 0x2d8   : > { %v1383_v63 = vsub.f32 %v1372_v34, %v1381_v62 }
 0x2da   : > { %v1386_v1 = vmul.f32 1.442695, %v1383_v63 }
 0x2dc   : > { %3185 = vpow2.f32 %v1386_v1 }
 0x2e2   : > { %v3186_v2 = vpop.eup %3185 }
 0x2e3   : > { %v1391_v3 = vsel %vm1375_vm1, %v3186_v2, 0.0 }
 0x2e4   : > { %1392 = vadd.xlane.f32.xlu1 %v1391_v3 }
 0x2fd   : > { %1549 = vrot.lane.b32.xlu1 %v4104_v5, %s3649_s21 }
 0x305   : > { %1652 = vrot.lane.b32.xlu1 %v4061_v53, %s3650_s23 }
 0x306   : > { %v1512_v6 = vpop.xlane.xlu1 %1511 }
 0x307   : > { %3187 = vrcp.f32 %v1512_v6 }
 0x30d   : > { %v3188_v7 = vpop.eup %3187  ;;  %1699 = vrot.lane.b32.xlu1 %v4084_v32, %s3650_s23 }
 0x30e   : > { %v1518_v8 = vmul.f32 %v3188_v7, %v3180_v45 }
 0x310   : > { %v1520_v9 = vpack.c.bf16 %v1518_v8, %v1518_v8 }
 0x312   : > { %2785 = vmatmul.msk.bf16.vlgmr.msrb.gmra.mxu3 %vm1375_vm1, %v1520_v9 }
 0x315   : > { %1798 = vrot.lane.b32.xlu1 %v4053_v49, %s3651_s25 }
 0x31d   : > { %1773 = vrot.lane.b32.xlu1 %v4051_v47, %s3651_s25  ;;  %v1515_v49 = vpop.xlane.xlu0 %1514 }
 0x322   : > { %2805 = vmatmul.msk.bf16.vlgmr.msra.gmra.mxu3 %vm1336_vm0, %v1630_v61 }
 0x324   : > { %v1416_v10 = vpop.f32.mrf.mxu3 }
 0x325   : > { %1796 = vrot.lane.b32.xlu1 %v4061_v53, %s3651_s25 }
 0x32c   : > { %v1418_v11 = vpop.f32.mrf.mxu3 }
 0x330   : > { %v1655_v21 = vpop.permute.xlu0 %1654 }
 0x331   : > { %v1660_v23 = vsel %vm1336_vm0, %v1655_v21, 0 }
 0x357   : > { %v1393_v12 = vpop.xlane.xlu1 %1392 }
 0x358   : > { %3189 = vrcp.f32 %v1393_v12 }
 0x359   : > { %3191 = vrcp.f32 %v1515_v49 }
 0x35e   : > { %v3190_v14 = vpop.eup %3189 }
 0x35f   : > { %v1397_v15 = vmul.f32 %v3190_v14, %v3186_v2  ;;  %v3192_v47 = vpop.eup %3191 }
 0x360   : > { %v1519_v20 = vmul.f32 %v3192_v47, %v3184_v59 }
 0x361   : > { %v1399_v17 = vpack.c.bf16 %v1397_v15, %v1397_v15 }
 0x362   : > { %v1521_v24 = vpack.c.bf16 %v1519_v20, %v1519_v20 }
 0x363   : > { %2782 = vmatmul.msk.bf16.vlgmr.msrb.gmra.mxu0 %vm1375_vm1, %v1399_v17 }
 0x36f   : > { %v1550_v22 = vpop.permute.xlu1 %1549 }
 0x370   : > { %v1555_v53 = vsel %vm1403_vm2, %v1550_v22, 0 }
 0x371   : > { %1564 = vmatpush.bf16.msra.mxu0 %v1555_v53 }
 0x374   : > { %2786 = vmatmul.msk.bf16.vlgmr.msra.gmra.mxu0 %vm1375_vm1, %v1521_v24 }
 0x375   : > { %1669 = vmatpush.bf16.xpose.msrb.mxu0 %v1660_v23 }
 0x377   : > { %v1653_v25 = vpop.permute.xlu1 %1652 }
 0x37f   : > { %v1700_v26 = vpop.permute.xlu1 %1699 }
 0x380   : > { %v1705_v27 = vsel %vm1403_vm2, %v1700_v26, 0 }
 0x381   : > { %1714 = vmatpush.bf16.msrb.mxu1 %v1705_v27 }
 0x384   : > { %2806 = vmatmul.msk.bf16.vlgmr.msrb.gmra.mxu0 %vm1336_vm0, %v1653_v25 }
 0x387   : > { %v1799_v42 = vpop.permute.xlu1 %1798 }
 0x388   : > { %v1804_v45 = vsel %vm1336_vm0, %v1799_v42, 0 }
 0x395   : > { %v1542_v29 = vpop.f32.mrf.mxu3 }
 0x39d   : > { %v1544_v30 = vpop.f32.mrf.mxu3 }
 0x3a5   : > { %v1648_v33 = vpop.f32.mrf.mxu3 }
 0x3a6   : > { %v1649_v34 = vadd.f32 %v1648_v33, %v4071_v0 }
 0x3a8   : > { %v1675_v36 = vsel %vm1375_vm1, %v1649_v34, -inf }
 0x3a9   : > { %1676 = vmax.xlane.f32.xlu0 %v1675_v36 }
 0x3ad   : > { %v1650_v37 = vpop.f32.mrf.mxu3 }
 0x3ae   : > { %v2998_v37 = vld [vmem:[%s4002_s3 + $0x28] sm:$0xff] }
 0x3af   : > { %1763 = vmatpush.bf16.msrb.mxu3 %v2998_v37  ;;  %v3013_v37 = vld [vmem:[%s4005_s13 + $0x64] sm:$0xf] }
 0x3bd   : > { %1720 = vrot.lane.b32.xlu0 %v4104_v5, %s3650_s23 }
 0x3e0   : > { %v1435_v39 = vpop.f32.mrf.mxu0 }
 0x3e1   : > { %v1439_v40 = vpack.c.bf16 %v1435_v39, %v1416_v10 }
 0x3e3   : > { %2804 = vmatmul.msk.bf16.vlgmr.msra.gmra.mxu2 %vm1336_vm0, %v1439_v40  ;;  %v2997_v40 = vld [vmem:[%s4002_s3 + $0x20] sm:$0xff] }
 0x3e4   : > { %1764 = vmatpush.bf16.msrb.mxu3 %v2997_v40 }
 0x3e8   : > { %v1437_v41 = vpop.f32.mrf.mxu0 }
 0x3f1   : > { %v1566_v43 = vpop.f32.mrf.mxu0 }
 0x3f2   : > { %v1570_v44 = vpack.c.bf16 %v1566_v43, %v1542_v29 }
 0x3f4   : > { %2795 = vmatmul.msk.bf16.vlgmr.msra.gmra.mxu1 %vm1336_vm0, %v1570_v44 }
 0x3f5   : > { %1813 = vmatpush.bf16.xpose.msra.mxu1 %v1804_v45 }
 0x3f9   : > { %v1568_v46 = vpop.f32.mrf.mxu0 }
 0x401   : > { %v1671_v48 = vpop.f32.mrf.mxu0 }
 0x402   : > { %v1672_v59 = vadd.f32 %v1671_v48, %v4081_v28 }
 0x404   : > { %v1678_v60 = vsel %vm1375_vm1, %v1672_v59, -inf }
 0x409   : > { %v1673_v50 = vpop.f32.mrf.mxu0 }
 0x41c   : > { %v1677_v51 = vpop.xlane.xlu0 %1676 }
 0x41d   : > { %v1681_v52 = vsub.f32 %v1649_v34, %v1677_v51 }
 0x41f   : > { %v1683_v54 = vmul.f32 1.442695, %v1681_v52 }
 0x421   : > { %3193 = vpow2.f32 %v1683_v54 }
 0x427   : > { %v3194_v55 = vpop.eup %3193 }
 0x428   : > { %v1687_v56 = vsel %vm1375_vm1, %v3194_v55, 0.0 }
 0x429   : > { %1688 = vadd.xlane.f32.xlu2 %v1687_v56 }
 0x42f   : > { %v1721_v57 = vpop.permute.xlu0 %1720 }
 0x430   : > { %v1726_v58 = vsel %vm1403_vm2, %v1721_v57, 0 }
 0x431   : > { %1735 = vmatpush.bf16.msrb.mxu2 %v1726_v58 }
 0x441   : > { %1775 = vrot.lane.b32.xlu2 %v4043_v35, %s3651_s25  ;;  %v1774_v35 = vpop.permute.xlu1 %1773 }
 0x449   : > { %v1797_v8 = vpop.permute.xlu1 %1796 }
 0x466   : > { %v1624_v61 = vpop.f32.mrf.mxu2 }
 0x46a   : > { %1679 = vmax.xlane.f32.xlu2 %v1678_v60  ;;  %v3000_v60 = vld [vmem:[%s4002_s3 + $0x38] sm:$0xff] }
 0x46e   : > { %v1626_v41 = vpop.f32.mrf.mxu2 }
 0x471   : > { %v1595_v62 = vpop.f32.mrf.mxu1 }
 0x472   : > { %v4143_v63 = vadd.f32 %v1624_v61, %v1595_v62  ;;  %v2999_v61 = vld [vmem:[%s4002_s3 + $0x30] sm:$0xff] }
 0x479   : > { %v4150_v14 = vpop.f32.mrf.mxu1 }
 0x49c   : > { %v1689_v1 = vpop.xlane.xlu2 %1688 }
 0x49d   : > { %3195 = vrcp.f32 %v1689_v1 }
 0x4a3   : > { %v3196_v2 = vpop.eup %3195 }
 0x4a4   : > { %v1695_v3 = vmul.f32 %v3196_v2, %v3194_v55  ;;  %v1776_v4 = vpop.permute.xlu2 %1775 }
 0x4a5   : > { %v1781_v6 = vsel %vm1336_vm0, %v1776_v4, 0 }
 0x4a6   : > { %v1697_v7 = vpack.c.bf16 %v1695_v3, %v1695_v3  ;;  %1790 = vmatpush.bf16.xpose.msra.mxu0 %v1781_v6 }
 0x4a8   : > { %2807 = vmatmul.msk.bf16.vlgmr.msrb.gmra.mxu1 %vm1375_vm1, %v1697_v7  ;;  %v3171_v7 = vld [vmem:[%s4374_s11] ss:$0 sm:$0xff] }
 0x4ad   : > { %2818 = vmatmul.msk.bf16.vlgmr.msra.gmra.mxu0 %vm1336_vm0, %v1774_v35 }
 0x4ae   : > { %1907 = vmatpush.bf16.msrb.mxu0 %v3000_v60  ;;  %v2849_v60 = vld [vmem:[%s4005_s13 + $0x20] sm:$0xf] }
 0x4b2   : > { %1908 = vmatpush.bf16.msrb.mxu0 %v2999_v61  ;;  %v3006_v61 = vld [vmem:[%s4005_s13 + $0x24] sm:$0xf0] }
 0x4b8   : > { %2819 = vmatmul.msk.bf16.vlgmr.msra.gmra.mxu1 %vm1336_vm0, %v1797_v8 }
 0x4dd   : > { %v1680_v9 = vpop.xlane.xlu2 %1679 }
 0x4de   : > { %v1682_v10 = vsub.f32 %v1672_v59, %v1680_v9  ;;  %v1627_v9 = vadd.f32 %v1626_v41, %v4150_v14  ;;  %v2873_v41 = vld [vmem:[%s4005_s13 + $0x50] sm:$0xf] }
 0x4e0   : > { %v1685_v11 = vmul.f32 1.442695, %v1682_v10 }
 0x4e2   : > { %3197 = vpow2.f32 %v1685_v11 }
 0x4e8   : > { %v3198_v12 = vpop.eup %3197 }
 0x4e9   : > { %v1690_v13 = vsel %vm1375_vm1, %v3198_v12, 0.0 }
 0x4ea   : > { %1691 = vadd.xlane.f32.xlu1 %v1690_v13 }
 0x525   : > { %v1716_v15 = vpop.f32.mrf.mxu1 }
 0x52a   : > { %v1792_v16 = vpop.f32.mrf.mxu0 }
 0x52b   : > { %v1793_v17 = vadd.f32 %v1792_v16, %v4071_v0 }
 0x52d   : > { %v1718_v49 = vpop.f32.mrf.mxu1  ;;  %v1819_v47 = vsel %vm1375_vm1, %v1793_v17, -inf }
 0x52e   : > { %1820 = vmax.xlane.f32.xlu0 %v1819_v47 }
 0x532   : > { %v1794_v20 = vpop.f32.mrf.mxu0 }
 0x535   : > { %v1815_v21 = vpop.f32.mrf.mxu1 }
 0x536   : > { %v1816_v22 = vadd.f32 %v1815_v21, %v4081_v28 }
 0x538   : > { %v1822_v53 = vsel %vm1375_vm1, %v1816_v22, -inf }
 0x539   : > { %1823 = vmax.xlane.f32.xlu2 %v1822_v53 }
 0x53d   : > { %v1817_v23 = vpop.f32.mrf.mxu1 }
 0x55d   : > { %v1692_v24 = vpop.xlane.xlu1 %1691 }
 0x55e   : > { %3199 = vrcp.f32 %v1692_v24 }
 0x564   : > { %v3200_v25 = vpop.eup %3199 }
 0x565   : > { %v1696_v26 = vmul.f32 %v3200_v25, %v3198_v12 }
 0x567   : > { %v1698_v27 = vpack.c.bf16 %v1696_v26, %v1696_v26 }
 0x569   : > { %2808 = vmatmul.msk.bf16.vlgmr.msrb.gmra.mxu2 %vm1375_vm1, %v1698_v27 }
 0x5a1   : > { %v1821_v0 = vpop.xlane.xlu0 %1820 }
 0x5a2   : > { %v1825_v29 = vsub.f32 %v1793_v17, %v1821_v0  ;;  %v3652_v17 = vmov 128.0   ;;  %v2889_v0 = vld [vmem:[%s4005_s13 + $0x70] sm:$0xf] }
 0x5a4   : > { %v1827_v30 = vmul.f32 1.442695, %v1825_v29  ;;  %v3016_v29 = vld [vmem:[%s4005_s13 + $0x74] sm:$0xf0] }
 0x5a6   : > { %3201 = vpow2.f32 %v1827_v30  ;;  %v3015_v30 = vld [vmem:[%s4005_s13 + $0x74] sm:$0xf] }
 0x5ac   : > { %v3202_v31 = vpop.eup %3201  ;;  %v1824_v33 = vpop.xlane.xlu2 %1823 }
 0x5ad   : > { %v1826_v28 = vsub.f32 %v1816_v22, %v1824_v33  ;;  %v1831_v34 = vsel %vm1375_vm1, %v3202_v31, 0.0  ;;  %v2891_v33 = vld [vmem:[%s4005_s13 + $0x78] sm:$0xf0] }
 0x5ae   : > { %1832 = vadd.xlane.f32.xlu1 %v1831_v34  ;;  %v2881_v34 = vld [vmem:[%s4005_s13 + $0x60] sm:$0xf] }
 0x5af   : > { %v1829_v36 = vmul.f32 1.442695, %v1826_v28  ;;  %v2894_v28 = vor.u32 %v3015_v30, %v2891_v33 }
 0x5b1   : > { %3203 = vpow2.f32 %v1829_v36  ;;  %v3014_v36 = vld [vmem:[%s4005_s13 + $0x64] sm:$0xf0] }
 0x5b7   : > { %v3204_v38 = vpop.eup %3203 }
 0x5b8   : > { %v1834_v39 = vsel %vm1375_vm1, %v3204_v38, 0.0 }
 0x5b9   : > { %1835 = vadd.xlane.f32.xlu2 %v1834_v39  ;;  %v2883_v39 = vld [vmem:[%s4005_s13 + $0x68] sm:$0xf0] }
 0x5ba   : > { %v2886_v40 = vor.u32 %v3013_v37, %v2883_v39 }
 0x5c7   : > { %1843 = vrot.lane.b32.xlu1 %v4084_v32, %s3651_s25 }
 0x5d1   : > { %1864 = vrot.lane.b32.xlu2 %v4104_v5, %s3651_s25 }
 0x5ec   : > { %v1737_v42 = vpop.f32.mrf.mxu2 }
 0x5ed   : > { %v1741_v43 = vpack.c.bf16 %v1737_v42, %v1716_v15  ;;  %v3012_v42 = vld [vmem:[%s4005_s13 + $0x54] sm:$0xf0] }
 0x5ef   : > { %2817 = vmatmul.msk.bf16.vlgmr.msrb.gmra.mxu3 %vm1336_vm0, %v1741_v43  ;;  %v3011_v43 = vld [vmem:[%s4005_s13 + $0x54] sm:$0xf] }
 0x5f4   : > { %v1739_v44 = vpop.f32.mrf.mxu2 }
 0x5f5   : > { %v2874_v44 = vor.u32 %v3012_v42, %v2873_v41  ;;  %v3172_v42 = vld [vmem:[%s889_s6] ss:$0 sm:$0xff] }
 0x621   : > { %v1833_v45 = vpop.xlane.xlu1 %1832 }
 0x62c   : > { %v1836_v46 = vpop.xlane.xlu2 %1835 }
 0x62d   : > { %3205 = vrcp.f32 %v1836_v46 }
 0x62e   : > { %3207 = vrcp.f32 %v1833_v45  ;;  %v2875_v45 = vld [vmem:[%s4005_s13 + $0x58] sm:$0xf0] }
 0x62f   : > { %3209 = vrcp.f32 %v3652_v17  ;;  %v2878_v46 = vor.u32 %v3011_v43, %v2875_v45 }
 0x633   : > { %v3206_v48 = vpop.eup %3205 }
 0x634   : > { %v1840_v50 = vmul.f32 %v3206_v48, %v3204_v38  ;;  %v1865_v51 = vpop.permute.xlu2 %1864  ;;  %v3208_v32 = vpop.eup %3207  ;;  %v2882_v38 = vor.u32 %v3014_v36, %v2881_v34  ;;  %v2865_v48 = vld [vmem:[%s4005_s13 + $0x40] sm:$0xf] }
 0x635   : > { %v1870_v52 = vsel %vm1403_vm2, %v1865_v51, 0  ;;  %v1839_v5 = vmul.f32 %v3208_v32, %v3202_v31  ;;  %v3210_v49 = vpop.eup %3209  ;;  %v2890_v31 = vor.u32 %v3016_v29, %v2889_v0  ;;  %v3009_v51 = vld [vmem:[%s4005_s13 + $0x44] sm:$0xf]  ;;  %v3030_v0 = vld [vmem:[%s4007_s7 + $0x68] sm:$0xff] }
 0x636   : > { %v1842_v54 = vpack.c.bf16 %v1840_v50, %v1840_v50  ;;  %1879 = vmatpush.bf16.msra.mxu3 %v1870_v52  ;;  %v1932_v47 = vmul.f32 128.0, %v3210_v49  ;;  %vm1936_vm3 = vweird.f32 %v3210_v49  ;;  %v3010_v50 = vld [vmem:[%s4005_s13 + $0x44] sm:$0xf0]  ;;  %v2867_v52 = vld [vmem:[%s4005_s13 + $0x48] sm:$0xf0] }
 0x637   : > { %v1841_v57 = vpack.c.bf16 %v1839_v5, %v1839_v5  ;;  %2087 = vmatpush.bf16.msrb.mxu1 %v2890_v31  ;;  %v2866_v32 = vor.u32 %v3010_v50, %v2865_v48  ;;  %v2857_v5 = vld [vmem:[%s4005_s13 + $0x30] sm:$0xf]  ;;  %v3021_v31 = vld [vmem:[%s4007_s7 + $0x20] sm:$0xff]  ;;  %v3173_v48 = vld [vmem:[%s1027_s19] ss:$0 sm:$0xff] }
 0x638   : > { %v1933_v20 = vsub.f32 1.0, %v1932_v47  ;;  %v3024_v47 = vld [vmem:[%s4007_s7 + $0x38] sm:$0xff] }
 0x639   : > { %v1844_v55 = vpop.permute.xlu1 %1843  ;;  %2821 = vmatmul.msk.bf16.vlgmr.msra.gmra.mxu3 %vm1375_vm1, %v1842_v54  ;;  %v2870_v54 = vor.u32 %v3009_v51, %v2867_v52  ;;  %v3020_v52 = vld [vmem:[%s4007_s7 + $0x18] sm:$0xff] }
 0x63a   : > { %v1849_v56 = vsel %vm1403_vm2, %v1844_v55, 0  ;;  %v1934_v21 = vmul.f32 %v3210_v49, %v1933_v20  ;;  %v3008_v55 = vld [vmem:[%s4005_s13 + $0x34] sm:$0xf0]  ;;  %2253 = vmatpush.bf16.msrb.mxu3 %v3024_v47 }
 0x63b   : > { %1858 = vmatpush.bf16.msra.mxu2 %v1849_v56  ;;  %2088 = vmatpush.bf16.msrb.mxu1 %v2882_v38  ;;  %v3007_v56 = vld [vmem:[%s4005_s13 + $0x34] sm:$0xf]  ;;  %v3032_v20 = vld [vmem:[%s4007_s7 + $0x78] sm:$0xff] }
 0x63c   : > { %v1935_v14 = vadd.f32 %v3210_v49, %v1934_v21  ;;  %2267 = vmatpush.bf16.msra.mxu0 %v3032_v20 }
 0x63e   : > { %2820 = vmatmul.msk.bf16.vlgmr.msra.gmra.mxu2 %vm1375_vm1, %v1841_v57  ;;  %v2858_v57 = vor.u32 %v3008_v55, %v2857_v5  ;;  %v3028_v5 = vld [vmem:[%s4007_s7 + $0x58] sm:$0xff]  ;;  %v3018_v55 = vld [vmem:[%s4007_s7 + $0x8] sm:$0xff] }
 0x63f   : > { %2101 = vmatpush.bf16.msrb.mxu2 %v2894_v28  ;;  %2089 = vmatpush.bf16.msrb.mxu1 %v2874_v44 }
 0x643   : > { %2102 = vmatpush.bf16.msrb.mxu2 %v2886_v40  ;;  %2090 = vmatpush.bf16.msrb.mxu1 %v2866_v32 }
 0x647   : > { %2103 = vmatpush.bf16.msrb.mxu2 %v2878_v46  ;;  %2091 = vmatpush.bf16.msrb.mxu1 %v2858_v57  ;;  %v3017_v57 = vld [vmem:[%s4007_s7] sm:$0xff] }
 0x64b   : > { %2104 = vmatpush.bf16.msrb.mxu2 %v2870_v54  ;;  %v3019_v54 = vld [vmem:[%s4007_s7 + $0x10] sm:$0xff] }
 0x672   : > { %v1766_v58 = vpop.f32.mrf.mxu3 }
 0x673   : > { %v1771_v59 = vadd.f32 %v1766_v58, %v4143_v63  ;;  %v2859_v58 = vld [vmem:[%s4005_s13 + $0x38] sm:$0xf0] }
 0x67a   : > { %v1768_v62 = vpop.f32.mrf.mxu3 }
 0x67b   : > { %v1772_v11 = vadd.f32 %v1768_v62, %v1627_v9  ;;  %v3005_v62 = vld [vmem:[%s4005_s13 + $0x24] sm:$0xf]  ;;  %v3002_v9 = vld [vmem:[%s4005_s13 + $0x4] sm:$0xf0] }
 0x6bc   : > { %v1881_v1 = vpop.f32.mrf.mxu3 }
 0x6c1   : > { %v1860_v2 = vpop.f32.mrf.mxu2 }
 0x6c2   : > { %v1885_v3 = vpack.c.bf16 %v1881_v1, %v1860_v2  ;;  %v2850_v1 = vor.u32 %v3006_v61, %v2849_v60  ;;  %v2851_v2 = vld [vmem:[%s4005_s13 + $0x28] sm:$0xf0]  ;;  %v2001_v60 = vld [vmem:[%s3982_s17] sm:$0x3] }
 0x6c4   : > { %v1883_v4 = vpop.f32.mrf.mxu3  ;;  %2830 = vmatmul.msk.bf16.vlgmr.msrb.gmra.mxu0 %vm1336_vm0, %v1885_v3  ;;  %v2854_v3 = vor.u32 %v3005_v62, %v2851_v2  ;;  %2092 = vmatpush.bf16.msrb.mxu1 %v2850_v1  ;;  %v2003_v62 = vperm.slane %v2001_v60, 0 }
 0x6c5   : > { %v2841_v4 = vld [vmem:[%s4005_s13 + $0x10] sm:$0xf] }
 0x6c9   : > { %v1862_v6 = vpop.f32.mrf.mxu2 }
 0x6ca   : > { %v3004_v6 = vld [vmem:[%s4005_s13 + $0x14] sm:$0xf0] }
 0x741   : > { %v1910_v35 = vpop.f32.mrf.mxu0 }
 0x742   : > { %v1915_v8 = vadd.f32 %v1910_v35, %v1771_v59  ;;  %v2862_v59 = vor.u32 %v3007_v56, %v2859_v58  ;;  %v2842_v35 = vor.u32 %v3004_v6, %v2841_v4  ;;  %v3027_v56 = vld [vmem:[%s4007_s7 + $0x50] sm:$0xff]  ;;  %v3026_v58 = vld [vmem:[%s4007_s7 + $0x48] sm:$0xff]  ;;  %v2004_v4 = vperm.slane %v2001_v60, 1 }
 0x744   : > { %v1921_v63 = vadd.f32 %v3171_v7, %v1915_v8  ;;  %2105 = vmatpush.bf16.msrb.mxu2 %v2862_v59  ;;  %v2843_v8 = vld [vmem:[%s4005_s13 + $0x18] sm:$0xf0]  ;;  %2093 = vmatpush.bf16.msrb.mxu1 %v2842_v35  ;;  %v3025_v59 = vld [vmem:[%s4007_s7 + $0x40] sm:$0xff] }
 0x746   : > { %v1923_v10 = vadd.f32 %v1921_v63, %v4026_v18  ;;  %v4182_v18 = vsel %vm1936_vm3, %v3210_v49, %v1935_v14  ;;  %v2833_v63 = vld [vmem:[%s4005_s13] sm:$0xf] }
 0x748   : > { %1927 = vadd.xlane.f32.xlu0 %v1923_v10  ;;  %2106 = vmatpush.bf16.msrb.mxu2 %v2854_v3 }
 0x749   : > { %v1912_v12 = vpop.f32.mrf.mxu0 }
 0x74a   : > { %v1916_v13 = vadd.f32 %v1912_v12, %v1772_v11  ;;  %v3001_v12 = vld [vmem:[%s4005_s13 + $0x4] sm:$0xf] }
 0x74c   : > { %v1922_v15 = vadd.f32 %v3171_v7, %v1916_v13  ;;  %v3003_v7 = vld [vmem:[%s4005_s13 + $0x14] sm:$0xf]  ;;  %v2835_v13 = vld [vmem:[%s4005_s13 + $0x8] sm:$0xf0] }
 0x74d   : > { %v2846_v11 = vor.u32 %v3003_v7, %v2843_v8  ;;  %v2838_v17 = vor.u32 %v3001_v12, %v2835_v13 }
 0x74e   : > { %v1924_v16 = vadd.f32 %v1922_v15, %v4028_v19 }
 0x74f   : > { %2107 = vmatpush.bf16.msrb.mxu2 %v2846_v11 }
 0x750   : > { %1929 = vadd.xlane.f32.xlu0 %v1924_v16 }
 0x753   : > { %2108 = vmatpush.bf16.msrb.mxu2 %v2838_v17 }
 0x7bb   : > { %v1928_v22 = vpop.xlane.xlu0 %1927 }
 0x7bc   : > { %v1938_v53 = vmul.f32 %v4182_v18, %v1928_v22  ;;  %v3023_v22 = vld [vmem:[%s4007_s7 + $0x30] sm:$0xff] }
 0x7bd   : > { %2254 = vmatpush.bf16.msrb.mxu3 %v3023_v22 }
 0x7be   : > { %v4185_v23 = vsub.f32 %v1923_v10, %v1938_v53  ;;  %v3031_v53 = vld [vmem:[%s4007_s7 + $0x70] sm:$0xff] }
 0x7bf   : > { %2268 = vmatpush.bf16.msra.mxu0 %v3031_v53 }
 0x7c0   : > { %v1942_v19 = vmul.f32 %v4185_v23, %v4185_v23 }
 0x7c2   : > { %1944 = vadd.xlane.f32.xlu1 %v1942_v19 }
 0x7c3   : > { %v1930_v24 = vpop.xlane.xlu0 %1929  ;;  %2269 = vmatpush.bf16.msra.mxu0 %v3030_v0 }
 0x7c4   : > { %v1939_v25 = vmul.f32 %v4182_v18, %v1930_v24 }
 0x7c6   : > { %v4190_v26 = vsub.f32 %v1924_v16, %v1939_v25  ;;  %v2834_v16 = vor.u32 %v3002_v9, %v2833_v63 }
 0x7c8   : > { %v1943_v27 = vmul.f32 %v4190_v26, %v4190_v26  ;;  %2094 = vmatpush.bf16.msrb.mxu1 %v2834_v16 }
 0x7ca   : > { %1946 = vadd.xlane.f32.xlu2 %v1943_v27  ;;  %v3022_v27 = vld [vmem:[%s4007_s7 + $0x28] sm:$0xff] }
 0x7cb   : > { %2255 = vmatpush.bf16.msrb.mxu3 %v3022_v27 }
 0x7cf   : > { %2256 = vmatpush.bf16.msrb.mxu3 %v3021_v31 }
 0x7d3   : > { %2257 = vmatpush.bf16.msrb.mxu3 %v3020_v52 }
 0x7d7   : > { %2258 = vmatpush.bf16.msrb.mxu3 %v3019_v54 }
 0x7db   : > { %2259 = vmatpush.bf16.msrb.mxu3 %v3018_v55 }
 0x7df   : > { %2260 = vmatpush.bf16.msrb.mxu3 %v3017_v57 }
 0x835   : > { %v1945_v10 = vpop.xlane.xlu1 %1944 }
 0x836   : > { %v1948_v15 = vmul.f32 %v1945_v10, %v4182_v18 }
 0x838   : > { %v1950_v49 = vadd.f32 1e-06, %v1948_v15  ;;  %v3174_v15 = vld [vmem:[%s1034_s15] ss:$0 sm:$0xff] }
 0x83a   : > { %3211 = vrsqrt.f32 %v1950_v49  ;;  %vm1958_vm5 = vweird.f32 %v1950_v49 }
 0x83d   : > { %v1947_v21 = vpop.xlane.xlu2 %1946 }
 0x83e   : > { %v1949_v14 = vmul.f32 %v1947_v21, %v4182_v18 }
 0x840   : > { %v3212_v19 = vpop.eup %3211  ;;  %v1951_v24 = vadd.f32 1e-06, %v1949_v14 }
 0x841   : > { %v1953_v25 = vmul.f32 %v3212_v19, %v1950_v49  ;;  %vm1959_vm4 = vweird.f32 %v3212_v19 }
 0x842   : > { %3213 = vrsqrt.f32 %v1951_v24  ;;  %vm1960_vm6 = vmor %vm1958_vm5, %vm1959_vm4  ;;  %vm1968_vm8 = vweird.f32 %v1951_v24 }
 0x843   : > { %v1954_v29 = vmul.f32 %v3212_v19, %v1953_v25 }
 0x845   : > { %v1955_v30 = vmul.f32 0.5, %v1954_v29 }
 0x847   : > { %v1956_v33 = vsub.f32 1.5, %v1955_v30 }
 0x848   : > { %v3214_v28 = vpop.eup %3213 }
 0x849   : > { %v1957_v34 = vmul.f32 %v3212_v19, %v1956_v33  ;;  %v1963_v36 = vmul.f32 %v3214_v28, %v1951_v24  ;;  %vm1969_vm7 = vweird.f32 %v3214_v28 }
 0x84a   : > { %vm1970_vm9 = vmor %vm1968_vm8, %vm1969_vm7 }
 0x84b   : > { %v1964_v37 = vmul.f32 %v3214_v28, %v1963_v36  ;;  %v1961_v38 = vsel %vm1960_vm6, %v3212_v19, %v1957_v34 }
 0x84c   : > { %v1972_v41 = vmul.f32 %v1961_v38, %v4185_v23 }
 0x84d   : > { %v1965_v39 = vmul.f32 0.5, %v1964_v37 }
 0x84e   : > { %v1977_v46 = vmul.f32 %v3172_v42, %v1972_v41 }
 0x84f   : > { %v1966_v40 = vsub.f32 1.5, %v1965_v39 }
 0x850   : > { %v1982_v23 = vadd.f32 %v3173_v48, %v1977_v46 }
 0x851   : > { %v1967_v43 = vmul.f32 %v3214_v28, %v1966_v40 }
 0x853   : > { %v1971_v44 = vsel %vm1970_vm9, %v3214_v28, %v1967_v43 }
 0x854   : > { %v1973_v45 = vmul.f32 %v1971_v44, %v4190_v26  ;;  %v3029_v26 = vld [vmem:[%s4007_s7 + $0x60] sm:$0xff] }
 0x855   : > { %2270 = vmatpush.bf16.msra.mxu0 %v3029_v26 }
 0x856   : > { %v1978_v50 = vmul.f32 %v3172_v42, %v1973_v45 }
 0x858   : > { %v1983_v51 = vadd.f32 %v3173_v48, %v1978_v50  ;;  %v3175_v50 = vld [vmem:[%s1037_s12] ss:$0 sm:$0xff]  ;;  %s3653_s12 = smov [#allocation16]  }
 0x859   : > { %2271 = vmatpush.bf16.msra.mxu0 %v3028_v5  ;;  %s2345_s7 = sshll.u32 %s3653_s12, 4  ;;  %s2346_s7 = int_to_ptr.vmem [resolvable:$true] %s2345_s7 }
 0x85a   : > { %v1984_v32 = vpack.c.bf16 %v1983_v51, %v1982_v23 }
 0x85c   : > { %2095 = vmatmul.bf16.vlgmr.msrb.gmra.mxu1 %v1984_v32  ;;  %2109 = vmatmul.bf16.vlgmr.msrb.gmra.mxu2 %v1984_v32  ;;  %v3176_v32 = vld [vmem:[%s1040_s26] ss:$0 sm:$0xff]  ;;  %s3655_s26 = smov 8  }
 0x85d   : > { %2272 = vmatpush.bf16.msra.mxu0 %v3027_v56 }
 0x861   : > { %2273 = vmatpush.bf16.msra.mxu0 %v3026_v58 }
 0x865   : > { %2274 = vmatpush.bf16.msra.mxu0 %v3025_v59 }
 0x8d9   : > { %v2096_v61 = vpop.f32.mrf.mxu1 }
 0x8da   : > { %v2097_v2 = vadd.f32 %v2096_v61, %v2003_v62 }
 0x8dc   : > { %v2115_v7 = vmax.f32 %v2097_v2, 0.0 }
 0x8df   : > { %v2110_v1 = vpop.f32.mrf.mxu2 }
 0x8e0   : > { %v2111_v8 = vadd.f32 %v2110_v1, %v2004_v4 }
 0x8e1   : > { %v2098_v3 = vpop.f32.mrf.mxu1 }
 0x8e2   : > { %v2099_v6 = vadd.f32 %v2098_v3, %v2003_v62  ;;  %v2116_v11 = vmax.f32 %v2111_v8, 0.0 }
 0x8e4   : > { %v2117_v35 = vmax.f32 %v2099_v6, 0.0 }
 0x8e6   : > { %v2119_v63 = vpack.c.bf16 %v2117_v35, %v2115_v7 }
 0x8e7   : > { %v2112_v9 = vpop.f32.mrf.mxu2 }
 0x8e8   : > { %v2113_v10 = vadd.f32 %v2112_v9, %v2004_v4  ;;  %2261 = vmatmul.bf16.vlgmr.msrb.gmra.mxu3 %v2119_v63 }
 0x8ea   : > { %v2118_v12 = vmax.f32 %v2113_v10, 0.0 }
 0x8ec   : > { %v2120_v13 = vpack.c.bf16 %v2118_v12, %v2116_v11 }
 0x8ee   : > { %2275 = vmatmul.bf16.vlgmr.msra.gmra.mxu0 %v2120_v13 }
 0x96b   : > { %v2262_v16 = vpop.f32.mrf.mxu3  ;;  %v2276_v17 = vpop.f32.mrf.mxu0 }
 0x96c   : > { %v2263_v49 = vadd.f32 %v3174_v15, %v2262_v16 }
 0x96e   : > { %v2277_v47 = vadd.f32 %v2276_v17, %v2263_v49 }
 0x970   : > { %v2281_v20 = vadd.f32 %v2277_v47, %v1982_v23 }
 0x972   : > { %2285 = vadd.xlane.f32.xlu0 %v2281_v20 }
 0x973   : > { %v2264_v21 = vpop.f32.mrf.mxu3  ;;  %v2278_v22 = vpop.f32.mrf.mxu0 }
 0x974   : > { %v2265_v14 = vadd.f32 %v3174_v15, %v2264_v21 }
 0x976   : > { %v2279_v53 = vadd.f32 %v2278_v22, %v2265_v14 }
 0x978   : > { %v2282_v19 = vadd.f32 %v2279_v53, %v1983_v51 }
 0x97a   : > { %2287 = vadd.xlane.f32.xlu0 %v2282_v19 }
 0x9e5   : > { %v2286_v24 = vpop.xlane.xlu0 %2285 }
 0x9e6   : > { %v2289_v25 = vmul.f32 %v2286_v24, %v4182_v18 }
 0x9e8   : > { %v2291_v27 = vsub.f32 %v2281_v20, %v2289_v25 }
 0x9ea   : > { %v2293_v0 = vmul.f32 %v2291_v27, %v2291_v27 }
 0x9ec   : > { %2295 = vadd.xlane.f32.xlu0 %v2293_v0 }
 0x9ed   : > { %v2288_v29 = vpop.xlane.xlu0 %2287 }
 0x9ee   : > { %v2290_v30 = vmul.f32 %v2288_v29, %v4182_v18 }
 0x9f0   : > { %v2292_v31 = vsub.f32 %v2282_v19, %v2290_v30 }
 0x9f2   : > { %v2294_v33 = vmul.f32 %v2292_v31, %v2292_v31 }
 0x9f4   : > { %2297 = vadd.xlane.f32.xlu0 %v2294_v33 }
 0xa5f   : > { %v2296_v28 = vpop.xlane.xlu0 %2295 }
 0xa60   : > { %v2299_v34 = vmul.f32 %v2296_v28, %v4182_v18 }
 0xa62   : > { %v2301_v36 = vadd.f32 1e-06, %v2299_v34 }
 0xa64   : > { %3215 = vrsqrt.f32 %v2301_v36  ;;  %vm2309_vm11 = vweird.f32 %v2301_v36 }
 0xa67   : > { %v2298_v37 = vpop.xlane.xlu0 %2297 }
 0xa68   : > { %v2300_v38 = vmul.f32 %v2298_v37, %v4182_v18 }
 0xa6a   : > { %v3216_v39 = vpop.eup %3215  ;;  %v2302_v40 = vadd.f32 1e-06, %v2300_v38 }
 0xa6b   : > { %v2304_v41 = vmul.f32 %v3216_v39, %v2301_v36  ;;  %vm2310_vm10 = vweird.f32 %v3216_v39 }
 0xa6c   : > { %3217 = vrsqrt.f32 %v2302_v40  ;;  %vm2311_vm12 = vmor %vm2309_vm11, %vm2310_vm10  ;;  %vm2319_vm14 = vweird.f32 %v2302_v40 }
 0xa6d   : > { %v2305_v42 = vmul.f32 %v3216_v39, %v2304_v41 }
 0xa6f   : > { %v2306_v43 = vmul.f32 0.5, %v2305_v42 }
 0xa71   : > { %v2307_v44 = vsub.f32 1.5, %v2306_v43 }
 0xa72   : > { %v3218_v45 = vpop.eup %3217 }
 0xa73   : > { %v2308_v46 = vmul.f32 %v3216_v39, %v2307_v44  ;;  %v2314_v48 = vmul.f32 %v3218_v45, %v2302_v40  ;;  %vm2320_vm13 = vweird.f32 %v3218_v45 }
 0xa74   : > { %vm2321_vm15 = vmor %vm2319_vm14, %vm2320_vm13 }
 0xa75   : > { %v2312_v18 = vsel %vm2311_vm12, %v3216_v39, %v2308_v46  ;;  %v2315_v23 = vmul.f32 %v3218_v45, %v2314_v48 }
 0xa76   : > { %v2323_v51 = vmul.f32 %v2312_v18, %v2291_v27 }
 0xa77   : > { %v2316_v52 = vmul.f32 0.5, %v2315_v23 }
 0xa78   : > { %v2328_v26 = vmul.f32 %v3175_v50, %v2323_v51 }
 0xa79   : > { %v2317_v54 = vsub.f32 1.5, %v2316_v52 }
 0xa7a   : > { %v2333_v5 = vadd.f32 %v3176_v32, %v2328_v26 }
 0xa7b   : > { %v2318_v55 = vmul.f32 %v3218_v45, %v2317_v54 }
 0xa7c   : > { %2335 = vst [vmem:[#allocation16] sm:$0xff] %v2333_v5 }
 0xa7d   : > { %v2322_v56 = vsel %vm2321_vm15, %v3218_v45, %v2318_v55 }
 0xa7e   : > { %v2324_v57 = vmul.f32 %v2322_v56, %v2292_v31 }
 0xa80   : > { %v2329_v58 = vmul.f32 %v3175_v50, %v2324_v57 }
 0xa82   : > { %v2334_v59 = vadd.f32 %v3176_v32, %v2329_v58 }
 0xa84   : > { %2336 = vst [vmem:[#allocation16 + $0x8] sm:$0xff] %v2334_v59 }
 0xa85   : > { %3060 = dma.vmem_to_hbm [thread:$0]  (%p3103_p3), %s2346_s7, 256, %s2348_s20, [#allocation4], %s3654_s16, %s3654_s16, %s3655_s26  }
 0xa86   : > { %3614 = dma.done.wait (%p3103_p3), [#allocation4], 256  }
 0xa87   : > { %3616 = vsyncadd (%p3103_p3), [#allocation4], 4294967040 }
 0xa88 PF: > { %s4380_s21 = sld [smem:[#allocation22_spill]]  ;;  %s4384_s27 = smov %s3623_s28 }
 0xa89   : > { %s4381_s23 = sld [smem:[#allocation21_spill]]  ;;  %s4386_s30 = smov %s3635_s0 }
 0xa8a   : > { %s4382_s29 = sld [smem:[#allocation24_spill]] }
 0xa8b   : > { %s4383_s25 = sld [smem:[#allocation23_spill]] }
 0xa8e   : > { %s31_s19 = sadd.s32 1, %s4380_s21  }
 0xa8f   : > { %p28_p4 = scmp.ge.s32.totalorder %s31_s19, 4   ;;  %s4385_s28 = smov %s4381_s23 }
 0xa91   : > { %s4387_s0 = smov %s4383_s25  ;;  %30 = sbr.rel (!%p28_p4) target bundleno = 24 (0x18), region = 252 }
 0xa96   :  { %2364 = vsyncpa [#allocation3], 1 }
 0xa97   :  { %2366 = vsyncpa [#allocation3 + $0x1], 1 }
 0xa98   :  { %2367 = vsyncpa [#allocation6], 1 }
 0xa99   :  { %2368 = vsyncpa [#allocation4], 1 }
 0xa9a   :  { %2370 = vsyncpa [#allocation4 + $0x1], 1 }

</bundles_post_ra>
